<compile_context>
chip_gen: v6e
topology: v6e:2x2x1
jax: 0.10.0
libtpu: 0.0.40
codegen_flags: <defaults>
</compile_context>

<pallas_src>
import functools
import math

import jax
import jax.numpy as jnp
from jax.experimental import pallas as pl
from jax.experimental.pallas import tpu as pltpu


# ----------------------------- fused Pallas kernel -----------------------------

def _fused_model_kernel(
    # inputs
    x_ref, mask_ref, user_ref, emb_g_ref, emb_b_ref,
    wqkv_ref, bqkv_ref, wo_ref, bo_ref, ln1g_ref, ln1b_ref,
    w1_ref, b1_ref, w2_ref, b2_ref, ln2g_ref, ln2b_ref,
    wp_ref, bp_ref, wc1_ref, bc1_ref, wc2_ref, bc2_ref,
    # outputs
    probs_ref, dense_ref,
    *, B, S, H, nH, L,
):
    Dh = H // nH
    bf16 = jnp.bfloat16
    f32 = jnp.float32

    def layernorm(v, g, b):
        mu = jnp.mean(v, axis=-1, keepdims=True)
        vc = v - mu
        var = jnp.mean(vc * vc, axis=-1, keepdims=True)
        return vc * jax.lax.rsqrt(var + 1e-12) * g + b

    def matmul_bias(a_f32, w_bf16, b_f32):
        # bf16 MXU inputs, f32 accumulation, f32 bias add.
        return jnp.dot(a_f32.astype(bf16), w_bf16,
                       preferred_element_type=f32) + b_f32

    # ---- embedding LayerNorm (embedding dropout p=0.1 = identity in eval) ----
    x = layernorm(x_ref[...].astype(f32), emb_g_ref[...], emb_b_ref[...])   # (B*S, H)

    # Additive key mask shared by all heads / layers: (B, 1, S), f32.
    amask = ((1.0 - mask_ref[...]) * -1e9)[:, None, :]

    # ---- encoder layers (L is tiny and static -> unrolled Python loop) ----
    for l in range(L):
        qkv = matmul_bias(x, wqkv_ref[l], bqkv_ref[l])                      # (B*S, 3H)

        ctx_heads = []
        for h in range(nH):
            q = qkv[:, h * Dh:(h + 1) * Dh].reshape(B, S, Dh)
            k = qkv[:, H + h * Dh:H + (h + 1) * Dh].reshape(B, S, Dh)
            v = qkv[:, 2 * H + h * Dh:2 * H + (h + 1) * Dh].reshape(B, S, Dh)
            # 1/sqrt(Dh) is pre-folded into the Q columns of wqkv / bqkv.
            s = jnp.einsum("bqd,bkd->bqk", q.astype(bf16), k.astype(bf16),
                           preferred_element_type=f32) + amask              # (B, S, S)
            mx = jnp.max(s, axis=-1, keepdims=True)
            e = jnp.exp(s - mx)
            p = e * pl.reciprocal(jnp.sum(e, axis=-1, keepdims=True), approx=True)
            o = jnp.einsum("bqk,bkd->bqd", p.astype(bf16), v.astype(bf16),
                           preferred_element_type=f32)                      # (B, S, Dh)
            ctx_heads.append(o.reshape(B * S, Dh))
        ctx = jnp.concatenate(ctx_heads, axis=-1)                           # (B*S, H)

        attn_out = matmul_bias(ctx, wo_ref[l], bo_ref[l])
        h1 = layernorm(x + attn_out, ln1g_ref[l], ln1b_ref[l])              # fused residual + LN1

        ffn = matmul_bias(h1, w1_ref[l], b1_ref[l])                         # (B*S, I)
        # tanh-approx GELU (HF "gelu_new"); weights are synthetic anyway.
        ffn = 0.5 * ffn * (1.0 + jnp.tanh(
            0.7978845608028654 * (ffn + 0.044715 * ffn * ffn * ffn)))
        ffn = matmul_bias(ffn, w2_ref[l], b2_ref[l])
        x = layernorm(h1 + ffn, ln2g_ref[l], ln2b_ref[l])                   # fused residual + LN2

    # ---- BERT pooler: tanh(W_p . x[:, 0]) ----
    cls = jnp.concatenate([x[b * S:b * S + 1, :] for b in range(B)], axis=0)  # (B, H)
    pooled = jnp.tanh(
        jnp.dot(cls, wp_ref[...], preferred_element_type=f32) + bp_ref[...])

    # ---- BertClassifier head (dropout p=0.1 = identity in eval) ----
    feats = jnp.concatenate([pooled, user_ref[...]], axis=-1)               # (B, H+U)
    dense = jnp.maximum(
        jnp.dot(feats, wc1_ref[...], preferred_element_type=f32) + bc1_ref[...],
        0.0)                                                                # (B, C) pre-BN, post-ReLU
    # eval-mode BatchNorm1d is folded into wc2 / bc2 on the host.
    logits = jnp.dot(dense, wc2_ref[...], preferred_element_type=f32) + bc2_ref[...]
    mx = jnp.max(logits, axis=-1, keepdims=True)
    e = jnp.exp(logits - mx)
    probs_ref[...] = e / jnp.sum(e, axis=-1, keepdims=True)                 # exact softmax (f32)
    dense_ref[...] = dense


def _fused_forward_pallas(x_emb, mask_f32, user_fea, fp, cfg):
    B, S = mask_f32.shape
    H, nH, L = cfg["hidden"], cfg["heads"], cfg["layers"]
    C, K = cfg["hsz"], cfg["categories"]
    vm = pl.BlockSpec(memory_space=pltpu.MemorySpace.VMEM)
    operands = (
        x_emb, mask_f32, user_fea, fp["emb_g"], fp["emb_b"],
        fp["wqkv"], fp["bqkv"], fp["wo"], fp["bo"], fp["ln1_g"], fp["ln1_b"],
        fp["w1"], fp["b1"], fp["w2"], fp["b2"], fp["ln2_g"], fp["ln2_b"],
        fp["wp"], fp["bp"], fp["wc1"], fp["bc1"], fp["wc2"], fp["bc2"],
    )
    probs, dense = pl.pallas_call(
        functools.partial(_fused_model_kernel, B=B, S=S, H=H, nH=nH, L=L),
        out_shape=(jax.ShapeDtypeStruct((B, K), jnp.float32),
                   jax.ShapeDtypeStruct((B, C), jnp.float32)),
        in_specs=[vm] * len(operands),
        out_specs=(vm, vm),
    )(*operands)
    return probs, dense


# ----------------------------- parameters -----------------------------

def _normal(key, shape, std=0.02):
    return (jax.random.normal(key, shape) * std).astype(jnp.float32)


def _xavier_normal_t(key, out_f, in_f):
    # nn.init.xavier_normal_ on a (out,in) weight; stored transposed (in,out).
    std = math.sqrt(2.0 / (in_f + out_f))
    return (jax.random.normal(key, (out_f, in_f)) * std).astype(jnp.float32).T


def init_params(key, cfg):
    H, L = cfg["hidden"], cfg["layers"]
    I, V, P = cfg["intermediate"], cfg["vocab"], cfg["max_pos"]
    U, C, K = cfg["user"], cfg["hsz"], cfg["categories"]
    keys = iter(jax.random.split(key, 256))

    p = {
        "word_emb": _normal(next(keys), (V, H)),
        "pos_emb": _normal(next(keys), (P, H)),
        "type_emb": _normal(next(keys), (2, H)),
        "emb_ln_g": jnp.ones((H,), jnp.float32),
        "emb_ln_b": jnp.zeros((H,), jnp.float32),
        "layers": [],
    }
    for _ in range(L):
        p["layers"].append({
            "wq": _normal(next(keys), (H, H)), "bq": jnp.zeros((1, H), jnp.float32),
            "wk": _normal(next(keys), (H, H)), "bk": jnp.zeros((1, H), jnp.float32),
            "wv": _normal(next(keys), (H, H)), "bv": jnp.zeros((1, H), jnp.float32),
            "wo": _normal(next(keys), (H, H)), "bo": jnp.zeros((1, H), jnp.float32),
            "ln1_g": jnp.ones((H,), jnp.float32), "ln1_b": jnp.zeros((H,), jnp.float32),
            "w1": _normal(next(keys), (H, I)), "b1": jnp.zeros((1, I), jnp.float32),
            "w2": _normal(next(keys), (I, H)), "b2": jnp.zeros((1, H), jnp.float32),
            "ln2_g": jnp.ones((H,), jnp.float32), "ln2_b": jnp.zeros((H,), jnp.float32),
        })
    # pooler
    p["wp"] = _normal(next(keys), (H, H))
    p["bp"] = jnp.zeros((1, H), jnp.float32)
    # BertClassifier
    p["cls_w1"] = _xavier_normal_t(next(keys), C, H + U)     # (H+U, C)
    p["cls_b1"] = jnp.zeros((1, C), jnp.float32)
    p["bn_g"] = jnp.ones((C,), jnp.float32)
    p["bn_b"] = jnp.zeros((C,), jnp.float32)
    p["bn_rm"] = jnp.zeros((C,), jnp.float32)
    p["bn_rv"] = jnp.ones((C,), jnp.float32)
    p["cls_w2"] = _xavier_normal_t(next(keys), K, C)         # (C, K)
    p["cls_b2"] = jnp.zeros((1, K), jnp.float32)
    return p


def prepare_inference_params(p, cfg):
    """Fuse / fold / stack parameters for the single fused inference kernel."""
    H, nH = cfg["hidden"], cfg["heads"]
    scale = 1.0 / math.sqrt(H // nH)
    bf16 = jnp.bfloat16

    def stack(name):
        return jnp.stack([lyr[name] for lyr in p["layers"]])

    # QKV fused into one (H, 3H) weight; 1/sqrt(Dh) folded into the Q part.
    wqkv = jnp.stack([jnp.concatenate([lyr["wq"] * scale, lyr["wk"], lyr["wv"]], axis=1)
                      for lyr in p["layers"]])                        # (L, H, 3H)
    bqkv = jnp.stack([jnp.concatenate([lyr["bq"] * scale, lyr["bk"], lyr["bv"]], axis=1)
                      for lyr in p["layers"]])                        # (L, 1, 3H)

    # Eval-mode BatchNorm folded into the final classifier dense (keeps the
    # returned pre-BN `dense_features` exact).
    bn_scale = p["bn_g"] / jnp.sqrt(p["bn_rv"] + 1e-5)
    bn_shift = p["bn_b"] - p["bn_rm"] * bn_scale
    wc2 = bn_scale[:, None] * p["cls_w2"]                             # (C, K)
    bc2 = bn_shift[None, :] @ p["cls_w2"] + p["cls_b2"]               # (1, K)

    return {
        # embedding tables stay f32 for the glue gather
        "word_emb": p["word_emb"], "pos_emb": p["pos_emb"], "type_emb": p["type_emb"],
        "emb_g": p["emb_ln_g"].reshape(1, -1), "emb_b": p["emb_ln_b"].reshape(1, -1),
        # encoder matmul weights in bf16 (MXU inputs), everything else f32
        "wqkv": wqkv.astype(bf16), "bqkv": bqkv,
        "wo": stack("wo").astype(bf16), "bo": stack("bo"),
        "ln1_g": stack("ln1_g")[:, None, :], "ln1_b": stack("ln1_b")[:, None, :],
        "w1": stack("w1").astype(bf16), "b1": stack("b1"),
        "w2": stack("w2").astype(bf16), "b2": stack("b2"),
        "ln2_g": stack("ln2_g")[:, None, :], "ln2_b": stack("ln2_b")[:, None, :],
        "wp": p["wp"], "bp": p["bp"],
        "wc1": p["cls_w1"], "bc1": p["cls_b1"],
        "wc2": wc2, "bc2": bc2,
    }


# ----------------------------- forward pass -----------------------------

def bert_based_model_forward(fp, seq_ids, masks, user_fea, cfg):
    B, S = seq_ids.shape
    H = cfg["hidden"]

    # Embedding gather + sum is plain JAX glue (no clean in-kernel gather here).
    x = (jnp.take(fp["word_emb"], seq_ids, axis=0)
         + fp["pos_emb"][None, :S, :]
         + fp["type_emb"][0][None, None, :]).reshape(B * S, H).astype(jnp.float32)
    mask_f32 = masks.astype(jnp.float32)

    probs, dense_features = _fused_forward_pallas(x, mask_f32, user_fea, fp, cfg)
    return [probs, dense_features]


# ----------------------------- main -----------------------------

if __name__ == "__main__":
    cfg = dict(vocab=100, max_pos=64, hidden=32, heads=2, layers=2,
               intermediate=64, user=4, hsz=16, categories=5)
    key = jax.random.PRNGKey(0)
    kp, kid, ku = jax.random.split(key, 3)
    raw_params = init_params(kp, cfg)
    fused_params = prepare_inference_params(raw_params, cfg)

    B, S = 2, 8
    seq_ids = jax.random.randint(kid, (B, S), 0, cfg["vocab"], dtype=jnp.int32)
    masks = jnp.array([[1, 1, 1, 1, 1, 1, 1, 1],
                       [1, 1, 1, 1, 1, 1, 0, 0]], dtype=jnp.int32)
    user_fea = jax.random.normal(ku, (B, cfg["user"]), dtype=jnp.float32)

    fwd = jax.jit(functools.partial(bert_based_model_forward, cfg=cfg))
    probs, mixed_fea = fwd(fused_params, seq_ids, masks, user_fea)
    jax.block_until_ready((probs, mixed_fea))

    assert probs.shape == (B, cfg["categories"])
    assert mixed_fea.shape == (B, cfg["hsz"])
    assert bool(jnp.all(jnp.isfinite(probs)))
    assert bool(jnp.allclose(jnp.sum(probs, axis=-1), 1.0, atol=1e-5))
    print("KERNEL_OK")
</pallas_src>

<mosaic_0001>
module attributes {stable_mosaic.version = 11 : i64} {
  func.func @_fused_model_kernel(%arg0: memref<16x32xf32, #tpu.memory_space<vmem>>, %arg1: memref<2x8xf32, #tpu.memory_space<vmem>>, %arg2: memref<2x4xf32, #tpu.memory_space<vmem>>, %arg3: memref<1x32xf32, #tpu.memory_space<vmem>>, %arg4: memref<1x32xf32, #tpu.memory_space<vmem>>, %arg5: memref<2x32x96xbf16, #tpu.memory_space<vmem>>, %arg6: memref<2x1x96xf32, #tpu.memory_space<vmem>>, %arg7: memref<2x32x32xbf16, #tpu.memory_space<vmem>>, %arg8: memref<2x1x32xf32, #tpu.memory_space<vmem>>, %arg9: memref<2x1x32xf32, #tpu.memory_space<vmem>>, %arg10: memref<2x1x32xf32, #tpu.memory_space<vmem>>, %arg11: memref<2x32x64xbf16, #tpu.memory_space<vmem>>, %arg12: memref<2x1x64xf32, #tpu.memory_space<vmem>>, %arg13: memref<2x64x32xbf16, #tpu.memory_space<vmem>>, %arg14: memref<2x1x32xf32, #tpu.memory_space<vmem>>, %arg15: memref<2x1x32xf32, #tpu.memory_space<vmem>>, %arg16: memref<2x1x32xf32, #tpu.memory_space<vmem>>, %arg17: memref<32x32xf32, #tpu.memory_space<vmem>>, %arg18: memref<1x32xf32, #tpu.memory_space<vmem>>, %arg19: memref<36x16xf32, #tpu.memory_space<vmem>>, %arg20: memref<1x16xf32, #tpu.memory_space<vmem>>, %arg21: memref<16x5xf32, #tpu.memory_space<vmem>>, %arg22: memref<1x5xf32, #tpu.memory_space<vmem>>, %arg23: memref<2x5xf32, #tpu.memory_space<vmem>>, %arg24: memref<2x16xf32, #tpu.memory_space<vmem>>) attributes {dimension_semantics = [], scalar_prefetch = 0 : i64, scratch_operands = 0 : i64, tpu.core_type = #tpu.core_type<tc>} {
    %c0 = arith.constant 0 : index
    %c0_0 = arith.constant 0 : index
    %0 = vector.load %arg0[%c0, %c0_0] : memref<16x32xf32, #tpu.memory_space<vmem>>, vector<16x32xf32>
    %c0_1 = arith.constant 0 : index
    %c0_2 = arith.constant 0 : index
    %1 = vector.load %arg3[%c0_1, %c0_2] : memref<1x32xf32, #tpu.memory_space<vmem>>, vector<1x32xf32>
    %c0_3 = arith.constant 0 : index
    %c0_4 = arith.constant 0 : index
    %2 = vector.load %arg4[%c0_3, %c0_4] : memref<1x32xf32, #tpu.memory_space<vmem>>, vector<1x32xf32>
    %cst = arith.constant dense<0.000000e+00> : vector<16xf32>
    %3 = vector.multi_reduction <add>, %0, %cst [1] : vector<16x32xf32> to vector<16xf32>
    %4 = vector.shape_cast %3 : vector<16xf32> to vector<16x1xf32>
    %cst_5 = arith.constant 3.200000e+01 : f32
    %5 = vector.broadcast %cst_5 : f32 to vector<16x1xf32>
    %6 = arith.divf %4, %5 : vector<16x1xf32>
    %7 = vector.broadcast %6 : vector<16x1xf32> to vector<16x32xf32>
    %8 = arith.subf %0, %7 : vector<16x32xf32>
    %9 = arith.mulf %8, %8 : vector<16x32xf32>
    %cst_6 = arith.constant dense<0.000000e+00> : vector<16xf32>
    %10 = vector.multi_reduction <add>, %9, %cst_6 [1] : vector<16x32xf32> to vector<16xf32>
    %11 = vector.shape_cast %10 : vector<16xf32> to vector<16x1xf32>
    %cst_7 = arith.constant 3.200000e+01 : f32
    %12 = vector.broadcast %cst_7 : f32 to vector<16x1xf32>
    %13 = arith.divf %11, %12 : vector<16x1xf32>
    %cst_8 = arith.constant 9.99999996E-13 : f32
    %14 = vector.broadcast %cst_8 : f32 to vector<16x1xf32>
    %15 = arith.addf %13, %14 : vector<16x1xf32>
    %16 = math.rsqrt %15 : vector<16x1xf32>
    %17 = vector.broadcast %16 : vector<16x1xf32> to vector<16x32xf32>
    %18 = arith.mulf %8, %17 : vector<16x32xf32>
    %19 = vector.broadcast %1 : vector<1x32xf32> to vector<16x32xf32>
    %20 = arith.mulf %18, %19 : vector<16x32xf32>
    %21 = vector.broadcast %2 : vector<1x32xf32> to vector<16x32xf32>
    %22 = arith.addf %20, %21 : vector<16x32xf32>
    %c0_9 = arith.constant 0 : index
    %c0_10 = arith.constant 0 : index
    %23 = vector.load %arg1[%c0_9, %c0_10] : memref<2x8xf32, #tpu.memory_space<vmem>>, vector<2x8xf32>
    %cst_11 = arith.constant 1.000000e+00 : f32
    %24 = vector.broadcast %cst_11 : f32 to vector<2x8xf32>
    %25 = arith.subf %24, %23 : vector<2x8xf32>
    %cst_12 = arith.constant -1.000000e+09 : f32
    %26 = vector.broadcast %cst_12 : f32 to vector<2x8xf32>
    %27 = arith.mulf %25, %26 : vector<2x8xf32>
    %28 = vector.shape_cast %27 : vector<2x8xf32> to vector<2x1x8xf32>
    %c0_13 = arith.constant 0 : index
    %c0_14 = arith.constant 0 : index
    %c0_15 = arith.constant 0 : index
    %29 = vector.load %arg5[%c0_13, %c0_14, %c0_15] : memref<2x32x96xbf16, #tpu.memory_space<vmem>>, vector<1x32x96xbf16>
    %30 = vector.shape_cast %29 : vector<1x32x96xbf16> to vector<32x96xbf16>
    %c0_16 = arith.constant 0 : index
    %c0_17 = arith.constant 0 : index
    %c0_18 = arith.constant 0 : index
    %31 = vector.load %arg6[%c0_16, %c0_17, %c0_18] : memref<2x1x96xf32, #tpu.memory_space<vmem>>, vector<1x1x96xf32>
    %32 = vector.shape_cast %31 : vector<1x1x96xf32> to vector<1x96xf32>
    %33 = arith.truncf %22 : vector<16x32xf32> to vector<16x32xbf16>
    %cst_19 = arith.constant dense<0.000000e+00> : vector<16x96xf32>
    %34 = tpu.matmul %33, %30, %cst_19 {dimension_numbers = #tpu.dot_dimension_numbers<[1], [0], [0], [1], [0, 0, 1, 1], [], []>} : vector<16x32xbf16>, vector<32x96xbf16>, vector<16x96xf32> -> vector<16x96xf32>
    %35 = vector.broadcast %32 : vector<1x96xf32> to vector<16x96xf32>
    %36 = arith.addf %34, %35 : vector<16x96xf32>
    %37 = vector.extract_strided_slice %36 {offsets = [0, 0], sizes = [16, 16], strides = [1, 1]} : vector<16x96xf32> to vector<16x16xf32>
    %38 = vector.shape_cast %37 : vector<16x16xf32> to vector<2x8x16xf32>
    %39 = vector.extract_strided_slice %36 {offsets = [0, 32], sizes = [16, 16], strides = [1, 1]} : vector<16x96xf32> to vector<16x16xf32>
    %40 = vector.shape_cast %39 : vector<16x16xf32> to vector<2x8x16xf32>
    %41 = vector.extract_strided_slice %36 {offsets = [0, 64], sizes = [16, 16], strides = [1, 1]} : vector<16x96xf32> to vector<16x16xf32>
    %42 = vector.shape_cast %41 : vector<16x16xf32> to vector<2x8x16xf32>
    %43 = arith.truncf %38 : vector<2x8x16xf32> to vector<2x8x16xbf16>
    %44 = arith.truncf %40 : vector<2x8x16xf32> to vector<2x8x16xbf16>
    "tpu.trace_start"() <{level = 10 : i32, message = "bqd,bkd->bqk"}> : () -> ()
    %cst_20 = arith.constant dense<0.000000e+00> : vector<2x8x8xf32>
    %45 = tpu.matmul %43, %44, %cst_20 {dimension_numbers = #tpu.dot_dimension_numbers<[2], [2], [1], [1], [0, 0, 0, 1, 1, 1], [0], [0]>} : vector<2x8x16xbf16>, vector<2x8x16xbf16>, vector<2x8x8xf32> -> vector<2x8x8xf32>
    "tpu.trace_stop"() : () -> ()
    %46 = vector.broadcast %28 : vector<2x1x8xf32> to vector<2x8x8xf32>
    %47 = arith.addf %45, %46 : vector<2x8x8xf32>
    %cst_21 = arith.constant dense<0xFF800000> : vector<2x8xf32>
    %48 = vector.multi_reduction <maximumf>, %47, %cst_21 [2] : vector<2x8x8xf32> to vector<2x8xf32>
    %49 = vector.shape_cast %48 : vector<2x8xf32> to vector<2x8x1xf32>
    %50 = vector.broadcast %49 : vector<2x8x1xf32> to vector<2x8x8xf32>
    %51 = arith.subf %47, %50 : vector<2x8x8xf32>
    %52 = math.exp %51 : vector<2x8x8xf32>
    %cst_22 = arith.constant dense<0.000000e+00> : vector<2x8xf32>
    %53 = vector.multi_reduction <add>, %52, %cst_22 [2] : vector<2x8x8xf32> to vector<2x8xf32>
    %54 = vector.shape_cast %53 : vector<2x8xf32> to vector<2x8x1xf32>
    %55 = tpu.reciprocal %54 {approx = true} : vector<2x8x1xf32> -> vector<2x8x1xf32>
    %56 = vector.broadcast %55 : vector<2x8x1xf32> to vector<2x8x8xf32>
    %57 = arith.mulf %52, %56 : vector<2x8x8xf32>
    %58 = arith.truncf %57 : vector<2x8x8xf32> to vector<2x8x8xbf16>
    %59 = arith.truncf %42 : vector<2x8x16xf32> to vector<2x8x16xbf16>
    "tpu.trace_start"() <{level = 10 : i32, message = "bqk,bkd->bqd"}> : () -> ()
    %cst_23 = arith.constant dense<0.000000e+00> : vector<2x8x16xf32>
    %60 = tpu.matmul %58, %59, %cst_23 {dimension_numbers = #tpu.dot_dimension_numbers<[2], [1], [1], [2], [0, 0, 0, 1, 1, 2], [0], [0]>} : vector<2x8x8xbf16>, vector<2x8x16xbf16>, vector<2x8x16xf32> -> vector<2x8x16xf32>
    "tpu.trace_stop"() : () -> ()
    %61 = vector.shape_cast %60 : vector<2x8x16xf32> to vector<16x16xf32>
    %62 = vector.extract_strided_slice %36 {offsets = [0, 16], sizes = [16, 16], strides = [1, 1]} : vector<16x96xf32> to vector<16x16xf32>
    %63 = vector.shape_cast %62 : vector<16x16xf32> to vector<2x8x16xf32>
    %64 = vector.extract_strided_slice %36 {offsets = [0, 48], sizes = [16, 16], strides = [1, 1]} : vector<16x96xf32> to vector<16x16xf32>
    %65 = vector.shape_cast %64 : vector<16x16xf32> to vector<2x8x16xf32>
    %66 = vector.extract_strided_slice %36 {offsets = [0, 80], sizes = [16, 16], strides = [1, 1]} : vector<16x96xf32> to vector<16x16xf32>
    %67 = vector.shape_cast %66 : vector<16x16xf32> to vector<2x8x16xf32>
    %68 = arith.truncf %63 : vector<2x8x16xf32> to vector<2x8x16xbf16>
    %69 = arith.truncf %65 : vector<2x8x16xf32> to vector<2x8x16xbf16>
    "tpu.trace_start"() <{level = 10 : i32, message = "bqd,bkd->bqk"}> : () -> ()
    %cst_24 = arith.constant dense<0.000000e+00> : vector<2x8x8xf32>
    %70 = tpu.matmul %68, %69, %cst_24 {dimension_numbers = #tpu.dot_dimension_numbers<[2], [2], [1], [1], [0, 0, 0, 1, 1, 1], [0], [0]>} : vector<2x8x16xbf16>, vector<2x8x16xbf16>, vector<2x8x8xf32> -> vector<2x8x8xf32>
    "tpu.trace_stop"() : () -> ()
    %71 = vector.broadcast %28 : vector<2x1x8xf32> to vector<2x8x8xf32>
    %72 = arith.addf %70, %71 : vector<2x8x8xf32>
    %cst_25 = arith.constant dense<0xFF800000> : vector<2x8xf32>
    %73 = vector.multi_reduction <maximumf>, %72, %cst_25 [2] : vector<2x8x8xf32> to vector<2x8xf32>
    %74 = vector.shape_cast %73 : vector<2x8xf32> to vector<2x8x1xf32>
    %75 = vector.broadcast %74 : vector<2x8x1xf32> to vector<2x8x8xf32>
    %76 = arith.subf %72, %75 : vector<2x8x8xf32>
    %77 = math.exp %76 : vector<2x8x8xf32>
    %cst_26 = arith.constant dense<0.000000e+00> : vector<2x8xf32>
    %78 = vector.multi_reduction <add>, %77, %cst_26 [2] : vector<2x8x8xf32> to vector<2x8xf32>
    %79 = vector.shape_cast %78 : vector<2x8xf32> to vector<2x8x1xf32>
    %80 = tpu.reciprocal %79 {approx = true} : vector<2x8x1xf32> -> vector<2x8x1xf32>
    %81 = vector.broadcast %80 : vector<2x8x1xf32> to vector<2x8x8xf32>
    %82 = arith.mulf %77, %81 : vector<2x8x8xf32>
    %83 = arith.truncf %82 : vector<2x8x8xf32> to vector<2x8x8xbf16>
    %84 = arith.truncf %67 : vector<2x8x16xf32> to vector<2x8x16xbf16>
    "tpu.trace_start"() <{level = 10 : i32, message = "bqk,bkd->bqd"}> : () -> ()
    %cst_27 = arith.constant dense<0.000000e+00> : vector<2x8x16xf32>
    %85 = tpu.matmul %83, %84, %cst_27 {dimension_numbers = #tpu.dot_dimension_numbers<[2], [1], [1], [2], [0, 0, 0, 1, 1, 2], [0], [0]>} : vector<2x8x8xbf16>, vector<2x8x16xbf16>, vector<2x8x16xf32> -> vector<2x8x16xf32>
    "tpu.trace_stop"() : () -> ()
    %86 = vector.shape_cast %85 : vector<2x8x16xf32> to vector<16x16xf32>
    %87 = tpu.concatenate %61, %86 in 1 : vector<16x16xf32>, vector<16x16xf32> -> vector<16x32xf32>
    %c0_28 = arith.constant 0 : index
    %c0_29 = arith.constant 0 : index
    %c0_30 = arith.constant 0 : index
    %88 = vector.load %arg7[%c0_28, %c0_29, %c0_30] : memref<2x32x32xbf16, #tpu.memory_space<vmem>>, vector<1x32x32xbf16>
    %89 = vector.shape_cast %88 : vector<1x32x32xbf16> to vector<32x32xbf16>
    %c0_31 = arith.constant 0 : index
    %c0_32 = arith.constant 0 : index
    %c0_33 = arith.constant 0 : index
    %90 = vector.load %arg8[%c0_31, %c0_32, %c0_33] : memref<2x1x32xf32, #tpu.memory_space<vmem>>, vector<1x1x32xf32>
    %91 = vector.shape_cast %90 : vector<1x1x32xf32> to vector<1x32xf32>
    %92 = arith.truncf %87 : vector<16x32xf32> to vector<16x32xbf16>
    %cst_34 = arith.constant dense<0.000000e+00> : vector<16x32xf32>
    %93 = tpu.matmul %92, %89, %cst_34 {dimension_numbers = #tpu.dot_dimension_numbers<[1], [0], [0], [1], [0, 0, 1, 1], [], []>} : vector<16x32xbf16>, vector<32x32xbf16>, vector<16x32xf32> -> vector<16x32xf32>
    %94 = vector.broadcast %91 : vector<1x32xf32> to vector<16x32xf32>
    %95 = arith.addf %93, %94 : vector<16x32xf32>
    %96 = arith.addf %22, %95 : vector<16x32xf32>
    %c0_35 = arith.constant 0 : index
    %c0_36 = arith.constant 0 : index
    %c0_37 = arith.constant 0 : index
    %97 = vector.load %arg9[%c0_35, %c0_36, %c0_37] : memref<2x1x32xf32, #tpu.memory_space<vmem>>, vector<1x1x32xf32>
    %98 = vector.shape_cast %97 : vector<1x1x32xf32> to vector<1x32xf32>
    %c0_38 = arith.constant 0 : index
    %c0_39 = arith.constant 0 : index
    %c0_40 = arith.constant 0 : index
    %99 = vector.load %arg10[%c0_38, %c0_39, %c0_40] : memref<2x1x32xf32, #tpu.memory_space<vmem>>, vector<1x1x32xf32>
    %100 = vector.shape_cast %99 : vector<1x1x32xf32> to vector<1x32xf32>
    %cst_41 = arith.constant dense<0.000000e+00> : vector<16xf32>
    %101 = vector.multi_reduction <add>, %96, %cst_41 [1] : vector<16x32xf32> to vector<16xf32>
    %102 = vector.shape_cast %101 : vector<16xf32> to vector<16x1xf32>
    %cst_42 = arith.constant 3.200000e+01 : f32
    %103 = vector.broadcast %cst_42 : f32 to vector<16x1xf32>
    %104 = arith.divf %102, %103 : vector<16x1xf32>
    %105 = vector.broadcast %104 : vector<16x1xf32> to vector<16x32xf32>
    %106 = arith.subf %96, %105 : vector<16x32xf32>
    %107 = arith.mulf %106, %106 : vector<16x32xf32>
    %cst_43 = arith.constant dense<0.000000e+00> : vector<16xf32>
    %108 = vector.multi_reduction <add>, %107, %cst_43 [1] : vector<16x32xf32> to vector<16xf32>
    %109 = vector.shape_cast %108 : vector<16xf32> to vector<16x1xf32>
    %cst_44 = arith.constant 3.200000e+01 : f32
    %110 = vector.broadcast %cst_44 : f32 to vector<16x1xf32>
    %111 = arith.divf %109, %110 : vector<16x1xf32>
    %cst_45 = arith.constant 9.99999996E-13 : f32
    %112 = vector.broadcast %cst_45 : f32 to vector<16x1xf32>
    %113 = arith.addf %111, %112 : vector<16x1xf32>
    %114 = math.rsqrt %113 : vector<16x1xf32>
    %115 = vector.broadcast %114 : vector<16x1xf32> to vector<16x32xf32>
    %116 = arith.mulf %106, %115 : vector<16x32xf32>
    %117 = vector.broadcast %98 : vector<1x32xf32> to vector<16x32xf32>
    %118 = arith.mulf %116, %117 : vector<16x32xf32>
    %119 = vector.broadcast %100 : vector<1x32xf32> to vector<16x32xf32>
    %120 = arith.addf %118, %119 : vector<16x32xf32>
    %c0_46 = arith.constant 0 : index
    %c0_47 = arith.constant 0 : index
    %c0_48 = arith.constant 0 : index
    %121 = vector.load %arg11[%c0_46, %c0_47, %c0_48] : memref<2x32x64xbf16, #tpu.memory_space<vmem>>, vector<1x32x64xbf16>
    %122 = vector.shape_cast %121 : vector<1x32x64xbf16> to vector<32x64xbf16>
    %c0_49 = arith.constant 0 : index
    %c0_50 = arith.constant 0 : index
    %c0_51 = arith.constant 0 : index
    %123 = vector.load %arg12[%c0_49, %c0_50, %c0_51] : memref<2x1x64xf32, #tpu.memory_space<vmem>>, vector<1x1x64xf32>
    %124 = vector.shape_cast %123 : vector<1x1x64xf32> to vector<1x64xf32>
    %125 = arith.truncf %120 : vector<16x32xf32> to vector<16x32xbf16>
    %cst_52 = arith.constant dense<0.000000e+00> : vector<16x64xf32>
    %126 = tpu.matmul %125, %122, %cst_52 {dimension_numbers = #tpu.dot_dimension_numbers<[1], [0], [0], [1], [0, 0, 1, 1], [], []>} : vector<16x32xbf16>, vector<32x64xbf16>, vector<16x64xf32> -> vector<16x64xf32>
    %127 = vector.broadcast %124 : vector<1x64xf32> to vector<16x64xf32>
    %128 = arith.addf %126, %127 : vector<16x64xf32>
    %cst_53 = arith.constant 5.000000e-01 : f32
    %129 = vector.broadcast %cst_53 : f32 to vector<16x64xf32>
    %130 = arith.mulf %129, %128 : vector<16x64xf32>
    %cst_54 = arith.constant 4.471500e-02 : f32
    %131 = vector.broadcast %cst_54 : f32 to vector<16x64xf32>
    %132 = arith.mulf %131, %128 : vector<16x64xf32>
    %133 = arith.mulf %132, %128 : vector<16x64xf32>
    %134 = arith.mulf %133, %128 : vector<16x64xf32>
    %135 = arith.addf %128, %134 : vector<16x64xf32>
    %cst_55 = arith.constant 0.797884583 : f32
    %136 = vector.broadcast %cst_55 : f32 to vector<16x64xf32>
    %137 = arith.mulf %136, %135 : vector<16x64xf32>
    %138 = math.tanh %137 : vector<16x64xf32>
    %cst_56 = arith.constant 1.000000e+00 : f32
    %139 = vector.broadcast %cst_56 : f32 to vector<16x64xf32>
    %140 = arith.addf %139, %138 : vector<16x64xf32>
    %141 = arith.mulf %130, %140 : vector<16x64xf32>
    %c0_57 = arith.constant 0 : index
    %c0_58 = arith.constant 0 : index
    %c0_59 = arith.constant 0 : index
    %142 = vector.load %arg13[%c0_57, %c0_58, %c0_59] : memref<2x64x32xbf16, #tpu.memory_space<vmem>>, vector<1x64x32xbf16>
    %143 = vector.shape_cast %142 : vector<1x64x32xbf16> to vector<64x32xbf16>
    %c0_60 = arith.constant 0 : index
    %c0_61 = arith.constant 0 : index
    %c0_62 = arith.constant 0 : index
    %144 = vector.load %arg14[%c0_60, %c0_61, %c0_62] : memref<2x1x32xf32, #tpu.memory_space<vmem>>, vector<1x1x32xf32>
    %145 = vector.shape_cast %144 : vector<1x1x32xf32> to vector<1x32xf32>
    %146 = arith.truncf %141 : vector<16x64xf32> to vector<16x64xbf16>
    %cst_63 = arith.constant dense<0.000000e+00> : vector<16x32xf32>
    %147 = tpu.matmul %146, %143, %cst_63 {dimension_numbers = #tpu.dot_dimension_numbers<[1], [0], [0], [1], [0, 0, 1, 1], [], []>} : vector<16x64xbf16>, vector<64x32xbf16>, vector<16x32xf32> -> vector<16x32xf32>
    %148 = vector.broadcast %145 : vector<1x32xf32> to vector<16x32xf32>
    %149 = arith.addf %147, %148 : vector<16x32xf32>
    %150 = arith.addf %120, %149 : vector<16x32xf32>
    %c0_64 = arith.constant 0 : index
    %c0_65 = arith.constant 0 : index
    %c0_66 = arith.constant 0 : index
    %151 = vector.load %arg15[%c0_64, %c0_65, %c0_66] : memref<2x1x32xf32, #tpu.memory_space<vmem>>, vector<1x1x32xf32>
    %152 = vector.shape_cast %151 : vector<1x1x32xf32> to vector<1x32xf32>
    %c0_67 = arith.constant 0 : index
    %c0_68 = arith.constant 0 : index
    %c0_69 = arith.constant 0 : index
    %153 = vector.load %arg16[%c0_67, %c0_68, %c0_69] : memref<2x1x32xf32, #tpu.memory_space<vmem>>, vector<1x1x32xf32>
    %154 = vector.shape_cast %153 : vector<1x1x32xf32> to vector<1x32xf32>
    %cst_70 = arith.constant dense<0.000000e+00> : vector<16xf32>
    %155 = vector.multi_reduction <add>, %150, %cst_70 [1] : vector<16x32xf32> to vector<16xf32>
    %156 = vector.shape_cast %155 : vector<16xf32> to vector<16x1xf32>
    %cst_71 = arith.constant 3.200000e+01 : f32
    %157 = vector.broadcast %cst_71 : f32 to vector<16x1xf32>
    %158 = arith.divf %156, %157 : vector<16x1xf32>
    %159 = vector.broadcast %158 : vector<16x1xf32> to vector<16x32xf32>
    %160 = arith.subf %150, %159 : vector<16x32xf32>
    %161 = arith.mulf %160, %160 : vector<16x32xf32>
    %cst_72 = arith.constant dense<0.000000e+00> : vector<16xf32>
    %162 = vector.multi_reduction <add>, %161, %cst_72 [1] : vector<16x32xf32> to vector<16xf32>
    %163 = vector.shape_cast %162 : vector<16xf32> to vector<16x1xf32>
    %cst_73 = arith.constant 3.200000e+01 : f32
    %164 = vector.broadcast %cst_73 : f32 to vector<16x1xf32>
    %165 = arith.divf %163, %164 : vector<16x1xf32>
    %cst_74 = arith.constant 9.99999996E-13 : f32
    %166 = vector.broadcast %cst_74 : f32 to vector<16x1xf32>
    %167 = arith.addf %165, %166 : vector<16x1xf32>
    %168 = math.rsqrt %167 : vector<16x1xf32>
    %169 = vector.broadcast %168 : vector<16x1xf32> to vector<16x32xf32>
    %170 = arith.mulf %160, %169 : vector<16x32xf32>
    %171 = vector.broadcast %152 : vector<1x32xf32> to vector<16x32xf32>
    %172 = arith.mulf %170, %171 : vector<16x32xf32>
    %173 = vector.broadcast %154 : vector<1x32xf32> to vector<16x32xf32>
    %174 = arith.addf %172, %173 : vector<16x32xf32>
    %c1 = arith.constant 1 : index
    %c0_75 = arith.constant 0 : index
    %c0_76 = arith.constant 0 : index
    %175 = vector.load %arg5[%c1, %c0_75, %c0_76] : memref<2x32x96xbf16, #tpu.memory_space<vmem>>, vector<1x32x96xbf16>
    %176 = vector.shape_cast %175 : vector<1x32x96xbf16> to vector<32x96xbf16>
    %c1_77 = arith.constant 1 : index
    %c0_78 = arith.constant 0 : index
    %c0_79 = arith.constant 0 : index
    %177 = vector.load %arg6[%c1_77, %c0_78, %c0_79] : memref<2x1x96xf32, #tpu.memory_space<vmem>>, vector<1x1x96xf32>
    %178 = vector.shape_cast %177 : vector<1x1x96xf32> to vector<1x96xf32>
    %179 = arith.truncf %174 : vector<16x32xf32> to vector<16x32xbf16>
    %cst_80 = arith.constant dense<0.000000e+00> : vector<16x96xf32>
    %180 = tpu.matmul %179, %176, %cst_80 {dimension_numbers = #tpu.dot_dimension_numbers<[1], [0], [0], [1], [0, 0, 1, 1], [], []>} : vector<16x32xbf16>, vector<32x96xbf16>, vector<16x96xf32> -> vector<16x96xf32>
    %181 = vector.broadcast %178 : vector<1x96xf32> to vector<16x96xf32>
    %182 = arith.addf %180, %181 : vector<16x96xf32>
    %183 = vector.extract_strided_slice %182 {offsets = [0, 0], sizes = [16, 16], strides = [1, 1]} : vector<16x96xf32> to vector<16x16xf32>
    %184 = vector.shape_cast %183 : vector<16x16xf32> to vector<2x8x16xf32>
    %185 = vector.extract_strided_slice %182 {offsets = [0, 32], sizes = [16, 16], strides = [1, 1]} : vector<16x96xf32> to vector<16x16xf32>
    %186 = vector.shape_cast %185 : vector<16x16xf32> to vector<2x8x16xf32>
    %187 = vector.extract_strided_slice %182 {offsets = [0, 64], sizes = [16, 16], strides = [1, 1]} : vector<16x96xf32> to vector<16x16xf32>
    %188 = vector.shape_cast %187 : vector<16x16xf32> to vector<2x8x16xf32>
    %189 = arith.truncf %184 : vector<2x8x16xf32> to vector<2x8x16xbf16>
    %190 = arith.truncf %186 : vector<2x8x16xf32> to vector<2x8x16xbf16>
    "tpu.trace_start"() <{level = 10 : i32, message = "bqd,bkd->bqk"}> : () -> ()
    %cst_81 = arith.constant dense<0.000000e+00> : vector<2x8x8xf32>
    %191 = tpu.matmul %189, %190, %cst_81 {dimension_numbers = #tpu.dot_dimension_numbers<[2], [2], [1], [1], [0, 0, 0, 1, 1, 1], [0], [0]>} : vector<2x8x16xbf16>, vector<2x8x16xbf16>, vector<2x8x8xf32> -> vector<2x8x8xf32>
    "tpu.trace_stop"() : () -> ()
    %192 = vector.broadcast %28 : vector<2x1x8xf32> to vector<2x8x8xf32>
    %193 = arith.addf %191, %192 : vector<2x8x8xf32>
    %cst_82 = arith.constant dense<0xFF800000> : vector<2x8xf32>
    %194 = vector.multi_reduction <maximumf>, %193, %cst_82 [2] : vector<2x8x8xf32> to vector<2x8xf32>
    %195 = vector.shape_cast %194 : vector<2x8xf32> to vector<2x8x1xf32>
    %196 = vector.broadcast %195 : vector<2x8x1xf32> to vector<2x8x8xf32>
    %197 = arith.subf %193, %196 : vector<2x8x8xf32>
    %198 = math.exp %197 : vector<2x8x8xf32>
    %cst_83 = arith.constant dense<0.000000e+00> : vector<2x8xf32>
    %199 = vector.multi_reduction <add>, %198, %cst_83 [2] : vector<2x8x8xf32> to vector<2x8xf32>
    %200 = vector.shape_cast %199 : vector<2x8xf32> to vector<2x8x1xf32>
    %201 = tpu.reciprocal %200 {approx = true} : vector<2x8x1xf32> -> vector<2x8x1xf32>
    %202 = vector.broadcast %201 : vector<2x8x1xf32> to vector<2x8x8xf32>
    %203 = arith.mulf %198, %202 : vector<2x8x8xf32>
    %204 = arith.truncf %203 : vector<2x8x8xf32> to vector<2x8x8xbf16>
    %205 = arith.truncf %188 : vector<2x8x16xf32> to vector<2x8x16xbf16>
    "tpu.trace_start"() <{level = 10 : i32, message = "bqk,bkd->bqd"}> : () -> ()
    %cst_84 = arith.constant dense<0.000000e+00> : vector<2x8x16xf32>
    %206 = tpu.matmul %204, %205, %cst_84 {dimension_numbers = #tpu.dot_dimension_numbers<[2], [1], [1], [2], [0, 0, 0, 1, 1, 2], [0], [0]>} : vector<2x8x8xbf16>, vector<2x8x16xbf16>, vector<2x8x16xf32> -> vector<2x8x16xf32>
    "tpu.trace_stop"() : () -> ()
    %207 = vector.shape_cast %206 : vector<2x8x16xf32> to vector<16x16xf32>
    %208 = vector.extract_strided_slice %182 {offsets = [0, 16], sizes = [16, 16], strides = [1, 1]} : vector<16x96xf32> to vector<16x16xf32>
    %209 = vector.shape_cast %208 : vector<16x16xf32> to vector<2x8x16xf32>
    %210 = vector.extract_strided_slice %182 {offsets = [0, 48], sizes = [16, 16], strides = [1, 1]} : vector<16x96xf32> to vector<16x16xf32>
    %211 = vector.shape_cast %210 : vector<16x16xf32> to vector<2x8x16xf32>
    %212 = vector.extract_strided_slice %182 {offsets = [0, 80], sizes = [16, 16], strides = [1, 1]} : vector<16x96xf32> to vector<16x16xf32>
    %213 = vector.shape_cast %212 : vector<16x16xf32> to vector<2x8x16xf32>
    %214 = arith.truncf %209 : vector<2x8x16xf32> to vector<2x8x16xbf16>
    %215 = arith.truncf %211 : vector<2x8x16xf32> to vector<2x8x16xbf16>
    "tpu.trace_start"() <{level = 10 : i32, message = "bqd,bkd->bqk"}> : () -> ()
    %cst_85 = arith.constant dense<0.000000e+00> : vector<2x8x8xf32>
    %216 = tpu.matmul %214, %215, %cst_85 {dimension_numbers = #tpu.dot_dimension_numbers<[2], [2], [1], [1], [0, 0, 0, 1, 1, 1], [0], [0]>} : vector<2x8x16xbf16>, vector<2x8x16xbf16>, vector<2x8x8xf32> -> vector<2x8x8xf32>
    "tpu.trace_stop"() : () -> ()
    %217 = vector.broadcast %28 : vector<2x1x8xf32> to vector<2x8x8xf32>
    %218 = arith.addf %216, %217 : vector<2x8x8xf32>
    %cst_86 = arith.constant dense<0xFF800000> : vector<2x8xf32>
    %219 = vector.multi_reduction <maximumf>, %218, %cst_86 [2] : vector<2x8x8xf32> to vector<2x8xf32>
    %220 = vector.shape_cast %219 : vector<2x8xf32> to vector<2x8x1xf32>
    %221 = vector.broadcast %220 : vector<2x8x1xf32> to vector<2x8x8xf32>
    %222 = arith.subf %218, %221 : vector<2x8x8xf32>
    %223 = math.exp %222 : vector<2x8x8xf32>
    %cst_87 = arith.constant dense<0.000000e+00> : vector<2x8xf32>
    %224 = vector.multi_reduction <add>, %223, %cst_87 [2] : vector<2x8x8xf32> to vector<2x8xf32>
    %225 = vector.shape_cast %224 : vector<2x8xf32> to vector<2x8x1xf32>
    %226 = tpu.reciprocal %225 {approx = true} : vector<2x8x1xf32> -> vector<2x8x1xf32>
    %227 = vector.broadcast %226 : vector<2x8x1xf32> to vector<2x8x8xf32>
    %228 = arith.mulf %223, %227 : vector<2x8x8xf32>
    %229 = arith.truncf %228 : vector<2x8x8xf32> to vector<2x8x8xbf16>
    %230 = arith.truncf %213 : vector<2x8x16xf32> to vector<2x8x16xbf16>
    "tpu.trace_start"() <{level = 10 : i32, message = "bqk,bkd->bqd"}> : () -> ()
    %cst_88 = arith.constant dense<0.000000e+00> : vector<2x8x16xf32>
    %231 = tpu.matmul %229, %230, %cst_88 {dimension_numbers = #tpu.dot_dimension_numbers<[2], [1], [1], [2], [0, 0, 0, 1, 1, 2], [0], [0]>} : vector<2x8x8xbf16>, vector<2x8x16xbf16>, vector<2x8x16xf32> -> vector<2x8x16xf32>
    "tpu.trace_stop"() : () -> ()
    %232 = vector.shape_cast %231 : vector<2x8x16xf32> to vector<16x16xf32>
    %233 = tpu.concatenate %207, %232 in 1 : vector<16x16xf32>, vector<16x16xf32> -> vector<16x32xf32>
    %c1_89 = arith.constant 1 : index
    %c0_90 = arith.constant 0 : index
    %c0_91 = arith.constant 0 : index
    %234 = vector.load %arg7[%c1_89, %c0_90, %c0_91] : memref<2x32x32xbf16, #tpu.memory_space<vmem>>, vector<1x32x32xbf16>
    %235 = vector.shape_cast %234 : vector<1x32x32xbf16> to vector<32x32xbf16>
    %c1_92 = arith.constant 1 : index
    %c0_93 = arith.constant 0 : index
    %c0_94 = arith.constant 0 : index
    %236 = vector.load %arg8[%c1_92, %c0_93, %c0_94] : memref<2x1x32xf32, #tpu.memory_space<vmem>>, vector<1x1x32xf32>
    %237 = vector.shape_cast %236 : vector<1x1x32xf32> to vector<1x32xf32>
    %238 = arith.truncf %233 : vector<16x32xf32> to vector<16x32xbf16>
    %cst_95 = arith.constant dense<0.000000e+00> : vector<16x32xf32>
    %239 = tpu.matmul %238, %235, %cst_95 {dimension_numbers = #tpu.dot_dimension_numbers<[1], [0], [0], [1], [0, 0, 1, 1], [], []>} : vector<16x32xbf16>, vector<32x32xbf16>, vector<16x32xf32> -> vector<16x32xf32>
    %240 = vector.broadcast %237 : vector<1x32xf32> to vector<16x32xf32>
    %241 = arith.addf %239, %240 : vector<16x32xf32>
    %242 = arith.addf %174, %241 : vector<16x32xf32>
    %c1_96 = arith.constant 1 : index
    %c0_97 = arith.constant 0 : index
    %c0_98 = arith.constant 0 : index
    %243 = vector.load %arg9[%c1_96, %c0_97, %c0_98] : memref<2x1x32xf32, #tpu.memory_space<vmem>>, vector<1x1x32xf32>
    %244 = vector.shape_cast %243 : vector<1x1x32xf32> to vector<1x32xf32>
    %c1_99 = arith.constant 1 : index
    %c0_100 = arith.constant 0 : index
    %c0_101 = arith.constant 0 : index
    %245 = vector.load %arg10[%c1_99, %c0_100, %c0_101] : memref<2x1x32xf32, #tpu.memory_space<vmem>>, vector<1x1x32xf32>
    %246 = vector.shape_cast %245 : vector<1x1x32xf32> to vector<1x32xf32>
    %cst_102 = arith.constant dense<0.000000e+00> : vector<16xf32>
    %247 = vector.multi_reduction <add>, %242, %cst_102 [1] : vector<16x32xf32> to vector<16xf32>
    %248 = vector.shape_cast %247 : vector<16xf32> to vector<16x1xf32>
    %cst_103 = arith.constant 3.200000e+01 : f32
    %249 = vector.broadcast %cst_103 : f32 to vector<16x1xf32>
    %250 = arith.divf %248, %249 : vector<16x1xf32>
    %251 = vector.broadcast %250 : vector<16x1xf32> to vector<16x32xf32>
    %252 = arith.subf %242, %251 : vector<16x32xf32>
    %253 = arith.mulf %252, %252 : vector<16x32xf32>
    %cst_104 = arith.constant dense<0.000000e+00> : vector<16xf32>
    %254 = vector.multi_reduction <add>, %253, %cst_104 [1] : vector<16x32xf32> to vector<16xf32>
    %255 = vector.shape_cast %254 : vector<16xf32> to vector<16x1xf32>
    %cst_105 = arith.constant 3.200000e+01 : f32
    %256 = vector.broadcast %cst_105 : f32 to vector<16x1xf32>
    %257 = arith.divf %255, %256 : vector<16x1xf32>
    %cst_106 = arith.constant 9.99999996E-13 : f32
    %258 = vector.broadcast %cst_106 : f32 to vector<16x1xf32>
    %259 = arith.addf %257, %258 : vector<16x1xf32>
    %260 = math.rsqrt %259 : vector<16x1xf32>
    %261 = vector.broadcast %260 : vector<16x1xf32> to vector<16x32xf32>
    %262 = arith.mulf %252, %261 : vector<16x32xf32>
    %263 = vector.broadcast %244 : vector<1x32xf32> to vector<16x32xf32>
    %264 = arith.mulf %262, %263 : vector<16x32xf32>
    %265 = vector.broadcast %246 : vector<1x32xf32> to vector<16x32xf32>
    %266 = arith.addf %264, %265 : vector<16x32xf32>
    %c1_107 = arith.constant 1 : index
    %c0_108 = arith.constant 0 : index
    %c0_109 = arith.constant 0 : index
    %267 = vector.load %arg11[%c1_107, %c0_108, %c0_109] : memref<2x32x64xbf16, #tpu.memory_space<vmem>>, vector<1x32x64xbf16>
    %268 = vector.shape_cast %267 : vector<1x32x64xbf16> to vector<32x64xbf16>
    %c1_110 = arith.constant 1 : index
    %c0_111 = arith.constant 0 : index
    %c0_112 = arith.constant 0 : index
    %269 = vector.load %arg12[%c1_110, %c0_111, %c0_112] : memref<2x1x64xf32, #tpu.memory_space<vmem>>, vector<1x1x64xf32>
    %270 = vector.shape_cast %269 : vector<1x1x64xf32> to vector<1x64xf32>
    %271 = arith.truncf %266 : vector<16x32xf32> to vector<16x32xbf16>
    %cst_113 = arith.constant dense<0.000000e+00> : vector<16x64xf32>
    %272 = tpu.matmul %271, %268, %cst_113 {dimension_numbers = #tpu.dot_dimension_numbers<[1], [0], [0], [1], [0, 0, 1, 1], [], []>} : vector<16x32xbf16>, vector<32x64xbf16>, vector<16x64xf32> -> vector<16x64xf32>
    %273 = vector.broadcast %270 : vector<1x64xf32> to vector<16x64xf32>
    %274 = arith.addf %272, %273 : vector<16x64xf32>
    %cst_114 = arith.constant 5.000000e-01 : f32
    %275 = vector.broadcast %cst_114 : f32 to vector<16x64xf32>
    %276 = arith.mulf %275, %274 : vector<16x64xf32>
    %cst_115 = arith.constant 4.471500e-02 : f32
    %277 = vector.broadcast %cst_115 : f32 to vector<16x64xf32>
    %278 = arith.mulf %277, %274 : vector<16x64xf32>
    %279 = arith.mulf %278, %274 : vector<16x64xf32>
    %280 = arith.mulf %279, %274 : vector<16x64xf32>
    %281 = arith.addf %274, %280 : vector<16x64xf32>
    %cst_116 = arith.constant 0.797884583 : f32
    %282 = vector.broadcast %cst_116 : f32 to vector<16x64xf32>
    %283 = arith.mulf %282, %281 : vector<16x64xf32>
    %284 = math.tanh %283 : vector<16x64xf32>
    %cst_117 = arith.constant 1.000000e+00 : f32
    %285 = vector.broadcast %cst_117 : f32 to vector<16x64xf32>
    %286 = arith.addf %285, %284 : vector<16x64xf32>
    %287 = arith.mulf %276, %286 : vector<16x64xf32>
    %c1_118 = arith.constant 1 : index
    %c0_119 = arith.constant 0 : index
    %c0_120 = arith.constant 0 : index
    %288 = vector.load %arg13[%c1_118, %c0_119, %c0_120] : memref<2x64x32xbf16, #tpu.memory_space<vmem>>, vector<1x64x32xbf16>
    %289 = vector.shape_cast %288 : vector<1x64x32xbf16> to vector<64x32xbf16>
    %c1_121 = arith.constant 1 : index
    %c0_122 = arith.constant 0 : index
    %c0_123 = arith.constant 0 : index
    %290 = vector.load %arg14[%c1_121, %c0_122, %c0_123] : memref<2x1x32xf32, #tpu.memory_space<vmem>>, vector<1x1x32xf32>
    %291 = vector.shape_cast %290 : vector<1x1x32xf32> to vector<1x32xf32>
    %292 = arith.truncf %287 : vector<16x64xf32> to vector<16x64xbf16>
    %cst_124 = arith.constant dense<0.000000e+00> : vector<16x32xf32>
    %293 = tpu.matmul %292, %289, %cst_124 {dimension_numbers = #tpu.dot_dimension_numbers<[1], [0], [0], [1], [0, 0, 1, 1], [], []>} : vector<16x64xbf16>, vector<64x32xbf16>, vector<16x32xf32> -> vector<16x32xf32>
    %294 = vector.broadcast %291 : vector<1x32xf32> to vector<16x32xf32>
    %295 = arith.addf %293, %294 : vector<16x32xf32>
    %296 = arith.addf %266, %295 : vector<16x32xf32>
    %c1_125 = arith.constant 1 : index
    %c0_126 = arith.constant 0 : index
    %c0_127 = arith.constant 0 : index
    %297 = vector.load %arg15[%c1_125, %c0_126, %c0_127] : memref<2x1x32xf32, #tpu.memory_space<vmem>>, vector<1x1x32xf32>
    %298 = vector.shape_cast %297 : vector<1x1x32xf32> to vector<1x32xf32>
    %c1_128 = arith.constant 1 : index
    %c0_129 = arith.constant 0 : index
    %c0_130 = arith.constant 0 : index
    %299 = vector.load %arg16[%c1_128, %c0_129, %c0_130] : memref<2x1x32xf32, #tpu.memory_space<vmem>>, vector<1x1x32xf32>
    %300 = vector.shape_cast %299 : vector<1x1x32xf32> to vector<1x32xf32>
    %cst_131 = arith.constant dense<0.000000e+00> : vector<16xf32>
    %301 = vector.multi_reduction <add>, %296, %cst_131 [1] : vector<16x32xf32> to vector<16xf32>
    %302 = vector.shape_cast %301 : vector<16xf32> to vector<16x1xf32>
    %cst_132 = arith.constant 3.200000e+01 : f32
    %303 = vector.broadcast %cst_132 : f32 to vector<16x1xf32>
    %304 = arith.divf %302, %303 : vector<16x1xf32>
    %305 = vector.broadcast %304 : vector<16x1xf32> to vector<16x32xf32>
    %306 = arith.subf %296, %305 : vector<16x32xf32>
    %307 = arith.mulf %306, %306 : vector<16x32xf32>
    %cst_133 = arith.constant dense<0.000000e+00> : vector<16xf32>
    %308 = vector.multi_reduction <add>, %307, %cst_133 [1] : vector<16x32xf32> to vector<16xf32>
    %309 = vector.shape_cast %308 : vector<16xf32> to vector<16x1xf32>
    %cst_134 = arith.constant 3.200000e+01 : f32
    %310 = vector.broadcast %cst_134 : f32 to vector<16x1xf32>
    %311 = arith.divf %309, %310 : vector<16x1xf32>
    %cst_135 = arith.constant 9.99999996E-13 : f32
    %312 = vector.broadcast %cst_135 : f32 to vector<16x1xf32>
    %313 = arith.addf %311, %312 : vector<16x1xf32>
    %314 = math.rsqrt %313 : vector<16x1xf32>
    %315 = vector.broadcast %314 : vector<16x1xf32> to vector<16x32xf32>
    %316 = arith.mulf %306, %315 : vector<16x32xf32>
    %317 = vector.broadcast %298 : vector<1x32xf32> to vector<16x32xf32>
    %318 = arith.mulf %316, %317 : vector<16x32xf32>
    %319 = vector.broadcast %300 : vector<1x32xf32> to vector<16x32xf32>
    %320 = arith.addf %318, %319 : vector<16x32xf32>
    %321 = vector.extract_strided_slice %320 {offsets = [0, 0], sizes = [1, 32], strides = [1, 1]} : vector<16x32xf32> to vector<1x32xf32>
    %322 = vector.extract_strided_slice %320 {offsets = [8, 0], sizes = [1, 32], strides = [1, 1]} : vector<16x32xf32> to vector<1x32xf32>
    %323 = tpu.concatenate %321, %322 in 0 : vector<1x32xf32>, vector<1x32xf32> -> vector<2x32xf32>
    %c0_136 = arith.constant 0 : index
    %c0_137 = arith.constant 0 : index
    %324 = vector.load %arg17[%c0_136, %c0_137] : memref<32x32xf32, #tpu.memory_space<vmem>>, vector<32x32xf32>
    %cst_138 = arith.constant dense<0.000000e+00> : vector<2x32xf32>
    %325 = tpu.matmul %323, %324, %cst_138 {dimension_numbers = #tpu.dot_dimension_numbers<[1], [0], [0], [1], [0, 0, 1, 1], [], []>} : vector<2x32xf32>, vector<32x32xf32>, vector<2x32xf32> -> vector<2x32xf32>
    %c0_139 = arith.constant 0 : index
    %c0_140 = arith.constant 0 : index
    %326 = vector.load %arg18[%c0_139, %c0_140] : memref<1x32xf32, #tpu.memory_space<vmem>>, vector<1x32xf32>
    %327 = vector.broadcast %326 : vector<1x32xf32> to vector<2x32xf32>
    %328 = arith.addf %325, %327 : vector<2x32xf32>
    %329 = math.tanh %328 : vector<2x32xf32>
    %c0_141 = arith.constant 0 : index
    %c0_142 = arith.constant 0 : index
    %330 = vector.load %arg2[%c0_141, %c0_142] : memref<2x4xf32, #tpu.memory_space<vmem>>, vector<2x4xf32>
    %331 = tpu.concatenate %329, %330 in 1 : vector<2x32xf32>, vector<2x4xf32> -> vector<2x36xf32>
    %c0_143 = arith.constant 0 : index
    %c0_144 = arith.constant 0 : index
    %332 = vector.load %arg19[%c0_143, %c0_144] : memref<36x16xf32, #tpu.memory_space<vmem>>, vector<36x16xf32>
    %cst_145 = arith.constant dense<0.000000e+00> : vector<2x16xf32>
    %333 = tpu.matmul %331, %332, %cst_145 {dimension_numbers = #tpu.dot_dimension_numbers<[1], [0], [0], [1], [0, 0, 1, 1], [], []>} : vector<2x36xf32>, vector<36x16xf32>, vector<2x16xf32> -> vector<2x16xf32>
    %c0_146 = arith.constant 0 : index
    %c0_147 = arith.constant 0 : index
    %334 = vector.load %arg20[%c0_146, %c0_147] : memref<1x16xf32, #tpu.memory_space<vmem>>, vector<1x16xf32>
    %335 = vector.broadcast %334 : vector<1x16xf32> to vector<2x16xf32>
    %336 = arith.addf %333, %335 : vector<2x16xf32>
    %cst_148 = arith.constant 0.000000e+00 : f32
    %337 = vector.broadcast %cst_148 : f32 to vector<2x16xf32>
    %338 = arith.maximumf %336, %337 : vector<2x16xf32>
    %c0_149 = arith.constant 0 : index
    %c0_150 = arith.constant 0 : index
    %339 = vector.load %arg21[%c0_149, %c0_150] : memref<16x5xf32, #tpu.memory_space<vmem>>, vector<16x5xf32>
    %cst_151 = arith.constant dense<0.000000e+00> : vector<2x5xf32>
    %340 = tpu.matmul %338, %339, %cst_151 {dimension_numbers = #tpu.dot_dimension_numbers<[1], [0], [0], [1], [0, 0, 1, 1], [], []>} : vector<2x16xf32>, vector<16x5xf32>, vector<2x5xf32> -> vector<2x5xf32>
    %c0_152 = arith.constant 0 : index
    %c0_153 = arith.constant 0 : index
    %341 = vector.load %arg22[%c0_152, %c0_153] : memref<1x5xf32, #tpu.memory_space<vmem>>, vector<1x5xf32>
    %342 = vector.broadcast %341 : vector<1x5xf32> to vector<2x5xf32>
    %343 = arith.addf %340, %342 : vector<2x5xf32>
    %cst_154 = arith.constant dense<0xFF800000> : vector<2xf32>
    %344 = vector.multi_reduction <maximumf>, %343, %cst_154 [1] : vector<2x5xf32> to vector<2xf32>
    %345 = vector.shape_cast %344 : vector<2xf32> to vector<2x1xf32>
    %346 = vector.broadcast %345 : vector<2x1xf32> to vector<2x5xf32>
    %347 = arith.subf %343, %346 : vector<2x5xf32>
    %348 = math.exp %347 : vector<2x5xf32>
    %cst_155 = arith.constant dense<0.000000e+00> : vector<2xf32>
    %349 = vector.multi_reduction <add>, %348, %cst_155 [1] : vector<2x5xf32> to vector<2xf32>
    %350 = vector.shape_cast %349 : vector<2xf32> to vector<2x1xf32>
    %351 = vector.broadcast %350 : vector<2x1xf32> to vector<2x5xf32>
    %352 = arith.divf %348, %351 : vector<2x5xf32>
    %c0_156 = arith.constant 0 : index
    %c0_157 = arith.constant 0 : index
    %353 = vector.load %arg23[%c0_156, %c0_157] : memref<2x5xf32, #tpu.memory_space<vmem>>, vector<2x5xf32>
    tpu.vector_store %arg23[%c0_156, %c0_157], %352 {strides = array<i32>} : memref<2x5xf32, #tpu.memory_space<vmem>>, vector<2x5xf32>,
    %c0_158 = arith.constant 0 : index
    %c0_159 = arith.constant 0 : index
    %354 = vector.load %arg24[%c0_158, %c0_159] : memref<2x16xf32, #tpu.memory_space<vmem>>, vector<2x16xf32>
    tpu.vector_store %arg24[%c0_158, %c0_159], %338 {strides = array<i32>} : memref<2x16xf32, #tpu.memory_space<vmem>>, vector<2x16xf32>,
    return
  }
}

</mosaic_0001>

<bundles_post_ra>
// kernel: bert_based_model_forward.1
= control target key start
LH: loop header
LB: loop body
LE: loop exit
PB: predicated region body
PF: predicated region fallthrough
CT: control target
= control target key end

     0   :  { %s3301_s0 = inlined_call_operand.vmem [shape: f32[16,32], index: 0, kind: input, shape index: {}]   ;;  %s3302_s1 = inlined_call_operand.vmem [shape: f32[2,8], index: 1, kind: input, shape index: {}]   ;;  %s3303_s2 = inlined_call_operand.vmem [shape: f32[2,4], index: 2, kind: input, shape index: {}]   ;;  %s3304_s3 = inlined_call_operand.vmem [shape: f32[1,32], index: 3, kind: input, shape index: {}]   ;;  %s3305_s4 = inlined_call_operand.vmem [shape: f32[1,32], index: 4, kind: input, shape index: {}]   ;;  %s3306_s5 = inlined_call_operand.vmem [shape: bf16[2,32,96], index: 5, kind: input, shape index: {}]   ;;  %s3307_s6 = inlined_call_operand.vmem [shape: f32[2,1,96], index: 6, kind: input, shape index: {}]   ;;  %s3308_s7 = inlined_call_operand.vmem [shape: bf16[2,32,32], index: 7, kind: input, shape index: {}]   ;;  %s3309_s8 = inlined_call_operand.vmem [shape: f32[2,1,32], index: 8, kind: input, shape index: {}]   ;;  %s3310_s9 = inlined_call_operand.vmem [shape: f32[2,1,32], index: 9, kind: input, shape index: {}]   ;;  %s3311_s10 = inlined_call_operand.vmem [shape: f32[2,1,32], index: 10, kind: input, shape index: {}]   ;;  %s3312_s11 = inlined_call_operand.vmem [shape: bf16[2,32,64], index: 11, kind: input, shape index: {}]   ;;  %s3313_s12 = inlined_call_operand.vmem [shape: f32[2,1,64], index: 12, kind: input, shape index: {}]   ;;  %s3314_s13 = inlined_call_operand.vmem [shape: bf16[2,64,32], index: 13, kind: input, shape index: {}]   ;;  %s3315_s14 = inlined_call_operand.vmem [shape: f32[2,1,32], index: 14, kind: input, shape index: {}]   ;;  %s3316_s15 = inlined_call_operand.vmem [shape: f32[2,1,32], index: 15, kind: input, shape index: {}]   ;;  %s3317_s16 = inlined_call_operand.vmem [shape: f32[2,1,32], index: 16, kind: input, shape index: {}]   ;;  %s3318_s17 = inlined_call_operand.vmem [shape: f32[32,32], index: 17, kind: input, shape index: {}]   ;;  %s3319_s18 = inlined_call_operand.vmem [shape: f32[1,32], index: 18, kind: input, shape index: {}]   ;;  %s3320_s19 = inlined_call_operand.vmem [shape: f32[36,16], index: 19, kind: input, shape index: {}]   ;;  %s3321_s20 = inlined_call_operand.vmem [shape: f32[1,16], index: 20, kind: input, shape index: {}]   ;;  %s3322_s21 = inlined_call_operand.vmem [shape: f32[16,5], index: 21, kind: input, shape index: {}]   ;;  %s3323_s22 = inlined_call_operand.vmem [shape: f32[1,5], index: 22, kind: input, shape index: {}]   ;;  %s3324_s23 = inlined_call_operand.hbm [shape: f32[2,5], index: 23, kind: output, shape index: {0}]   ;;  %s3325_s24 = inlined_call_operand.hbm [shape: f32[2,16], index: 24, kind: output, shape index: {1}]  }
   0x1   :  { %3336 = sst [smem:[#allocation8_spill]] %s3301_s0 }
   0x2   :  { %3337 = sst [smem:[#allocation9_spill]] %s3302_s1 }
   0x3   :  { %3338 = sst [smem:[#allocation10_spill]] %s3303_s2 }
   0x4   :  { %3339 = sst [smem:[#allocation11_spill]] %s3304_s3 }
   0x5   :  { %3340 = sst [smem:[#allocation12_spill]] %s3305_s4 }
   0x6   :  { %3341 = sst [smem:[#allocation13_spill]] %s3306_s5 }
   0x7   :  { %3342 = sst [smem:[#allocation14_spill]] %s3307_s6 }
   0x8   :  { %3343 = sst [smem:[#allocation15_spill]] %s3308_s7 }
   0x9   :  { %3344 = sst [smem:[#allocation16_spill]] %s3309_s8 }
   0xa   :  { %30 = vsyncpa [#allocation3], 0  ;;  %s3345_s27 = sld [smem:[#allocation8_spill]]  ;;  %vm83_vm0 = vcmask 261120  }
  0x10   :  { %v79_v0 = vld [vmem:[%s3345_s27] sm:$0xff]  ;;  %v80_v1 = vld [vmem:[%s3345_s27 + $0x8] sm:$0xff] }
  0x11   :  { %v84_v2 = vsel %vm83_vm0, %v79_v0, 0.0  ;;  %v87_v3 = vsel %vm83_vm0, %v80_v1, 0.0 }
  0x12   :  { %85 = vadd.xlane.f32.xlu0 %v84_v2 }
  0x16   :  { %88 = vadd.xlane.f32.xlu0 %v87_v3 }
  0x17   :  { %31 = vsyncpa [#allocation5], 0  ;;  %s3346_s0 = sld [smem:[#allocation13_spill]]  ;;  %v2708_v15 = vmov 0.0   ;;  %vm2709_vm1 = vmmov 0   ;;  %s2710_s6 = smov 96   ;;  %v134_v49 = vlaneseq }
  0x18   :  { %2357 = vmatprep.subr.bf16.mxu0 %v2708_v15  ;;  %2361 = vmatprep.mubr.msk.bf16.mxu0 %vm2709_vm1, %v2708_v15  ;;  %s3347_s8 = sld [smem:[#allocation11_spill]]  ;;  %vm236_vm2 = vcmask 130048   ;;  %v2711_v47 = vmov 1966171168   ;;  %vm332_vm3 = vcmask 64512   ;;  %s2712_s30 = smov 64  }
  0x19   :  { %2365 = vmatprep.subr.bf16.mxu1 %v2708_v15  ;;  %2367 = vmatprep.mubr.msk.bf16.mxu1 %vm2709_vm1, %v2708_v15  ;;  %s3348_s5 = sld [smem:[#allocation12_spill]]  ;;  %v132_v48 = vunpack.c.l.s4 %v2711_v47  ;;  %v135_v53 = vshrl.u32 %v134_v49, 7  ;;  %s2713_s3 = smov 80   ;;  %vm362_vm4 = vcmask 1043456   ;;  %vm924_vm5 = vcmask 523264  }
  0x1a   :  { %s3349_s28 = sld [smem:[#allocation14_spill]]  ;;  %s3334_s25 = smov 112   ;;  %vm1878_vm6 = vcmask 1040384   ;;  %vm1983_vm7 = vcmask 293888   ;;  %vm2156_vm8 = vcmask 123904   ;;  %vm2143_vm9 = vcmask 33792  }
  0x1b   :  { %s3350_s7 = sld [smem:[#allocation9_spill]]  ;;  %v133_v52 = vunpack.c.0.s8 %v132_v48  ;;  %v225_v58 = vsub.s32 0, %v135_v53  ;;  %s3331_s2 = smov 16  }
  0x1c   :  { %s3352_s4 = sld [smem:[#allocation16_spill]]  ;;  %s3355_s27 = smov 16  }
  0x1d   :  { %v2578_v14 = vld [vmem:[%s3346_s0 + $0x8] sm:$0xff]   ;;  %v2579_v16 = vld [vmem:[%s3346_s0] sm:$0xff]   ;;  %v136_v55 = vsub.s32 %v133_v52, %v135_v53 }
  0x1e   :  { %2358 = vmatpush3.bf16.msra.mxu0 %v2578_v14  ;;  %v2186_v25 = vld [vmem:[%s3347_s8] ss:$0 sm:$0xff]  ;;  %s3332_s8 = smov 48  }
  0x1f   :  { %2359 = vmatprep.subr.bf16.mxu0 %v2708_v15  ;;  %v2187_v29 = vld [vmem:[%s3348_s5] ss:$0 sm:$0xff]  ;;  %s3351_s5 = sld [smem:[#allocation15_spill]] }
  0x20   :  { %v2188_v34 = vld [vmem:[%s3349_s28] ss:$0 sm:$0xff] }
  0x21   :  { %v127_v50 = vld [vmem:[%s3350_s7] sm:$0x3] }
  0x22   :  { %2360 = vmatpush3.bf16.msra.mxu0 %v2579_v16  ;;  %v128_v51 = vsub.f32 1.0, %v127_v50 }
  0x23   :  { %2371 = vmatprep.subr.bf16.mxu0 %v2708_v15 }
  0x24   :  { %v129_v54 = vmul.f32 -1e+09, %v128_v51 }
  0x26   :  { %v137_v56 = vrot.slane %v129_v54, %v136_v55 }
  0x28   :  { %v145_v57 = vrot.slane %v137_v56, %v136_v55  ;;  %v138_v59 = vcombine.high %v137_v56, %v137_v56 }
  0x2a   :  { %v2910_v60 = vrot.slane %v145_v57, %v225_v58  ;;  %v152_v61 = vrot.slane %v138_v59, %v136_v55 }
  0x9b   :  { %v86_v4 = vpop.xlane.xlu0 %85 }
  0x9c   :  { %v91_v5 = vmul.f32 0.03125, %v86_v4 }
  0x9e   :  { %v93_v6 = vsub.f32 %v79_v0, %v91_v5  ;;  %v2913_v0 = vrot.slane %v152_v61, %v225_v58 }
  0x9f   :  { %v89_v7 = vpop.xlane.xlu0 %88 }
  0xa0   :  { %v92_v8 = vmul.f32 0.03125, %v89_v7  ;;  %v95_v9 = vmul.f32 %v93_v6, %v93_v6 }
  0xa2   :  { %v94_v10 = vsub.f32 %v80_v1, %v92_v8  ;;  %v97_v11 = vsel %vm83_vm0, %v95_v9, 0.0 }
  0xa3   :  { %98 = vadd.xlane.f32.xlu1 %v97_v11 }
  0xa4   :  { %v96_v12 = vmul.f32 %v94_v10, %v94_v10 }
  0xa6   :  { %v100_v13 = vsel %vm83_vm0, %v96_v12, 0.0 }
  0xa7   :  { %101 = vadd.xlane.f32.xlu1 %v100_v13 }
 0x12c   :  { %v99_v17 = vpop.xlane.xlu1 %98 }
 0x12d   :  { %v103_v18 = vmul.f32 0.03125, %v99_v17 }
 0x12f   :  { %v105_v19 = vadd.f32 1e-12, %v103_v18 }
 0x130   :  { %v102_v20 = vpop.xlane.xlu1 %101 }
 0x131   :  { %2598 = vrsqrt.f32 %v105_v19  ;;  %v104_v21 = vmul.f32 0.03125, %v102_v20 }
 0x133   :  { %v106_v22 = vadd.f32 1e-12, %v104_v21 }
 0x135   :  { %2600 = vrsqrt.f32 %v106_v22 }
 0x13e   :  { %v2599_v23 = vpop.eup %2598 }
 0x13f   :  { %v109_v24 = vmul.f32 %v2599_v23, %v93_v6 }
 0x141   :  { %v117_v28 = vmul.f32 %v2186_v25, %v109_v24 }
 0x142   :  { %v2601_v26 = vpop.eup %2600 }
 0x143   :  { %v110_v27 = vmul.f32 %v2601_v26, %v94_v10  ;;  %v2875_v31 = vadd.f32 %v2187_v29, %v117_v28 }
 0x145   :  { %v118_v30 = vmul.f32 %v2186_v25, %v110_v27 }
 0x147   :  { %v2877_v32 = vadd.f32 %v2187_v29, %v118_v30 }
 0x149   :  { %v158_v33 = vpack.c.bf16 %v2877_v32, %v2875_v31 }
 0x14b   :  { %2362 = vmatmul.mubr.msk.bf16.vlgmr.msra.gmra.mxu0 %vm83_vm0, %v158_v33 }
 0x14c   :  { %2373 = vmatprep.mubr.msk.bf16.mxu0 %vm2709_vm1, %v2708_v15 }
 0x20b   :  { %v214_v35 = vpop.f32.mrf.mxu0 }
 0x20c   :  { %v215_v36 = vadd.f32 %v2188_v34, %v214_v35 }
 0x20d   :  { %v2363_v37 = vpop.f32.mrf.mxu0 }
 0x20e   :  { %v2887_v38 = vpack.c.bf16 %v215_v36, %v215_v36 }
 0x20f   :  { %v217_v39 = vpop.f32.mrf.mxu0 }
 0x210   :  { %v218_v40 = vadd.f32 %v2188_v34, %v217_v39  ;;  %234 = vrot.lane.b32.xlu0 %v2887_v38, %s2710_s6 }
 0x211   :  { %v2364_v41 = vpop.f32.mrf.mxu0 }
 0x212   :  { %v2891_v42 = vpack.c.bf16 %v218_v40, %v218_v40 }
 0x214   :  { %284 = vrot.lane.b32.xlu1 %v2891_v42, %s2710_s6 }
 0x282   :  { %v235_v43 = vpop.permute.xlu0 %234 }
 0x283   :  { %v241_v44 = vsel %vm236_vm2, %v235_v43, 0 }
 0x284   :  { %2366 = vmatpush3.bf16.xpose.msra.mxu1 %v241_v44 }
 0x285   :  { %2377 = vmatprep.subr.bf16.mxu1 %v2708_v15 }
 0x286   :  { %v285_v45 = vpop.permute.xlu1 %284 }
 0x287   :  { %v290_v46 = vsel %vm236_vm2, %v285_v45, 0 }
 0x288   :  { %2372 = vmatpush3.bf16.xpose.msra.mxu0 %v290_v46 }
 0x289   :  { %2383 = vmatprep.subr.bf16.mxu0 %v2708_v15 }
 0x28b   :  { %2368 = vmatmul.mubr.msk.bf16.vlgmr.msra.gmra.mxu1 %vm236_vm2, %v2887_v38 }
 0x28c   :  { %2379 = vmatprep.mubr.msk.bf16.mxu1 %vm2709_vm1, %v2708_v15 }
 0x28f   :  { %2374 = vmatmul.mubr.msk.bf16.vlgmr.msra.gmra.mxu0 %vm236_vm2, %v2891_v42 }
 0x290   :  { %2385 = vmatprep.mubr.msk.bf16.mxu0 %vm2709_vm1, %v2708_v15 }
 0x34b   :  { %v277_v62 = vpop.f32.mrf.mxu1 }
 0x34c   :  { %v278_v63 = vadd.f32 %v277_v62, %v2910_v60 }
 0x34d   :  { %v2369_v1 = vpop.f32.mrf.mxu1 }
 0x34e   :  { %v333_v2 = vsel %vm332_vm3, %v278_v63, -inf }
 0x34f   :  { %v280_v3 = vpop.f32.mrf.mxu1  ;;  %334 = vmax.xlane.f32.xlu1 %v333_v2  ;;  %v326_v4 = vpop.f32.mrf.mxu0 }
 0x350   :  { %v327_v5 = vadd.f32 %v326_v4, %v2913_v0 }
 0x351   :  { %v2370_v6 = vpop.f32.mrf.mxu1  ;;  %v2375_v7 = vpop.f32.mrf.mxu0 }
 0x352   :  { %v336_v8 = vsel %vm332_vm3, %v327_v5, -inf }
 0x353   :  { %337 = vmax.xlane.f32.xlu0 %v336_v8  ;;  %v329_v9 = vpop.f32.mrf.mxu0 }
 0x355   :  { %v2376_v10 = vpop.f32.mrf.mxu0 }
 0x360   :  { %406 = vrot.lane.b32.xlu1 %v2891_v42, %s2712_s30 }
 0x364   :  { %456 = vrot.lane.b32.xlu1 %v2887_v38, %s2713_s3 }
 0x3d8   :  { %v335_v11 = vpop.xlane.xlu1 %334 }
 0x3d9   :  { %v339_v12 = vsub.f32 %v278_v63, %v335_v11 }
 0x3db   :  { %v341_v13 = vmul.f32 1.442695, %v339_v12 }
 0x3dc   :  { %v407_v14 = vpop.permute.xlu1 %406  ;;  %v338_v16 = vpop.xlane.xlu0 %337 }
 0x3dd   :  { %2602 = vpow2.f32 %v341_v13  ;;  %v412_v17 = vsel %vm362_vm4, %v407_v14, 0  ;;  %v340_v18 = vsub.f32 %v327_v5, %v338_v16 }
 0x3de   :  { %2384 = vmatpush3.bf16.msra.mxu0 %v412_v17 }
 0x3df   :  { %v343_v19 = vmul.f32 1.442695, %v340_v18  ;;  %2395 = vmatprep.subr.bf16.mxu0 %v2708_v15 }
 0x3e0   :  { %v457_v24 = vpop.permute.xlu1 %456 }
 0x3e1   :  { %2604 = vpow2.f32 %v343_v19  ;;  %v462_v35 = vsel %vm236_vm2, %v457_v24, 0  ;;  %v2581_v24 = vld [vmem:[%s3351_s5] sm:$0xff]  }
 0x3ea   :  { %v2603_v20 = vpop.eup %2602 }
 0x3eb   :  { %v345_v21 = vsel %vm332_vm3, %v2603_v20, 0.0 }
 0x3ec   :  { %346 = vadd.xlane.f32.xlu0 %v345_v21 }
 0x3ee   :  { %v2605_v22 = vpop.eup %2604 }
 0x3ef   :  { %v348_v23 = vsel %vm332_vm3, %v2605_v22, 0.0 }
 0x3f0   :  { %349 = vadd.xlane.f32.xlu1 %v348_v23  ;;  %v2580_v23 = vld [vmem:[%s3351_s5 + $0x8] sm:$0xff]  }
 0x401   :  { %506 = vrot.lane.b32.xlu1 %v2891_v42, %s2713_s3 }
 0x402   :  { %357 = vrot.lane.b32.xlu0 %v2887_v38, %s2712_s30 }
 0x405   :  { %504 = vrot.lane.b32.xlu1 %v2891_v42, %s3334_s25 }
 0x406   :  { %454 = vrot.lane.b32.xlu0 %v2887_v38, %s3334_s25 }
 0x475   :  { %v347_v25 = vpop.xlane.xlu0 %346 }
 0x476   :  { %2606 = vrcp.f32 %v347_v25 }
 0x479   :  { %v350_v26 = vpop.xlane.xlu1 %349  ;;  %v358_v27 = vpop.permute.xlu0 %357 }
 0x47a   :  { %2608 = vrcp.f32 %v350_v26  ;;  %v364_v28 = vsel %vm362_vm4, %v358_v27, 0 }
 0x47b   :  { %2378 = vmatpush3.bf16.msra.mxu1 %v364_v28 }
 0x47c   :  { %2389 = vmatprep.subr.bf16.mxu1 %v2708_v15 }
 0x47d   :  { %v507_v37 = vpop.permute.xlu1 %506  ;;  %v455_v41 = vpop.permute.xlu0 %454 }
 0x47e   :  { %v512_v40 = vsel %vm236_vm2, %v507_v37, 0 }
 0x481   :  { %v505_v43 = vpop.permute.xlu1 %504 }
 0x483   :  { %v2607_v29 = vpop.eup %2606 }
 0x484   :  { %v353_v30 = vmul.f32 %v2607_v29, %v2603_v20 }
 0x486   :  { %v355_v33 = vpack.c.bf16 %v353_v30, %v353_v30 }
 0x487   :  { %v2609_v34 = vpop.eup %2608 }
 0x488   :  { %2380 = vmatmul.mubr.msk.bf16.vlgmr.msra.gmra.mxu1 %vm332_vm3, %v355_v33  ;;  %v354_v36 = vmul.f32 %v2609_v34, %v2605_v22 }
 0x489   :  { %2390 = vmatpush3.bf16.xpose.msra.mxu1 %v462_v35  ;;  %2391 = vmatprep.mubr.msk.bf16.mxu1 %vm2709_vm1, %v2708_v15 }
 0x48a   :  { %v356_v39 = vpack.c.bf16 %v354_v36, %v354_v36  ;;  %2401 = vmatprep.subr.bf16.mxu1 %v2708_v15 }
 0x48c   :  { %2386 = vmatmul.mubr.msk.bf16.vlgmr.msra.gmra.mxu0 %vm332_vm3, %v356_v39 }
 0x48d   :  { %2396 = vmatpush3.bf16.xpose.msra.mxu0 %v512_v40  ;;  %2397 = vmatprep.mubr.msk.bf16.mxu0 %vm2709_vm1, %v2708_v15 }
 0x48e   :  { %2407 = vmatprep.subr.bf16.mxu0 %v2708_v15 }
 0x490   :  { %2392 = vmatmul.mubr.msk.bf16.vlgmr.msra.gmra.mxu1 %vm236_vm2, %v455_v41 }
 0x491   :  { %2403 = vmatprep.mubr.msk.bf16.mxu1 %vm2709_vm1, %v2708_v15 }
 0x494   :  { %2398 = vmatmul.mubr.msk.bf16.vlgmr.msra.gmra.mxu0 %vm236_vm2, %v505_v43 }
 0x495   :  { %2409 = vmatprep.mubr.msk.bf16.mxu0 %vm2709_vm1, %v2708_v15 }
 0x548   :  { %v2952_v44 = vpop.f32.mrf.mxu1 }
 0x54a   :  { %v2381_v45 = vpop.f32.mrf.mxu1 }
 0x54b   :  { %v2200_v45 = vld [vmem:[%s3352_s4] ss:$0 sm:$0xff] }
 0x54c   :  { %v403_v46 = vpop.f32.mrf.mxu1  ;;  %v2954_v47 = vpop.f32.mrf.mxu0 }
 0x54e   :  { %v2382_v48 = vpop.f32.mrf.mxu1  ;;  %v2387_v49 = vpop.f32.mrf.mxu0 }
 0x550   :  { %v451_v50 = vpop.f32.mrf.mxu0  ;;  %v498_v51 = vpop.f32.mrf.mxu1 }
 0x551   :  { %v499_v52 = vadd.f32 %v498_v51, %v2910_v60 }
 0x552   :  { %v2388_v53 = vpop.f32.mrf.mxu0  ;;  %v2393_v54 = vpop.f32.mrf.mxu1 }
 0x553   :  { %v554_v55 = vsel %vm332_vm3, %v499_v52, -inf }
 0x554   :  { %555 = vmax.xlane.f32.xlu0 %v554_v55  ;;  %v501_v56 = vpop.f32.mrf.mxu1  ;;  %v548_v57 = vpop.f32.mrf.mxu0 }
 0x555   :  { %v549_v58 = vadd.f32 %v548_v57, %v2913_v0 }
 0x556   :  { %v2394_v59 = vpop.f32.mrf.mxu1  ;;  %v2399_v61 = vpop.f32.mrf.mxu0 }
 0x557   :  { %v557_v62 = vsel %vm332_vm3, %v549_v58, -inf }
 0x558   :  { %558 = vmax.xlane.f32.xlu1 %v557_v62  ;;  %v551_v63 = vpop.f32.mrf.mxu0 }
 0x55a   :  { %v2400_v1 = vpop.f32.mrf.mxu0 }
 0x569   :  { %626 = vrot.lane.b32.xlu1 %v2891_v42, %s3332_s8 }
 0x5dd   :  { %v556_v2 = vpop.xlane.xlu0 %555 }
 0x5de   :  { %v560_v3 = vsub.f32 %v499_v52, %v556_v2  ;;  %v2583_v2 = vld [vmem:[%s3312_s11] sm:$0xff]  }
 0x5e0   :  { %v562_v4 = vmul.f32 1.442695, %v560_v3 }
 0x5e1   :  { %v559_v5 = vpop.xlane.xlu1 %558 }
 0x5e2   :  { %2610 = vpow2.f32 %v562_v4  ;;  %v561_v6 = vsub.f32 %v549_v58, %v559_v5 }
 0x5e4   :  { %v564_v7 = vmul.f32 1.442695, %v561_v6 }
 0x5e5   :  { %v627_v8 = vpop.permute.xlu1 %626 }
 0x5e6   :  { %2612 = vpow2.f32 %v564_v7  ;;  %v632_v9 = vsel %vm362_vm4, %v627_v8, 0 }
 0x5e7   :  { %2408 = vmatpush3.bf16.msra.mxu0 %v632_v9 }
 0x5e8   :  { %2421 = vmatprep.subr.bf16.mxu0 %v2708_v15 }
 0x5ef   :  { %v2611_v10 = vpop.eup %2610 }
 0x5f0   :  { %v566_v11 = vsel %vm332_vm3, %v2611_v10, 0.0 }
 0x5f1   :  { %567 = vadd.xlane.f32.xlu0 %v566_v11  ;;  %v2204_v11 = vld [vmem:[%s3310_s9] ss:$0 sm:$0xff] }
 0x5f3   :  { %v2613_v12 = vpop.eup %2612 }
 0x5f4   :  { %v569_v42 = vsel %vm332_vm3, %v2613_v12, 0.0 }
 0x5f5   :  { %570 = vadd.xlane.f32.xlu0 %v569_v42 }
 0x60b   :  { %578 = vrot.lane.b32.xlu0 %v2887_v38, %s3332_s8 }
 0x67a   :  { %v568_v13 = vpop.xlane.xlu0 %567 }
 0x67b   :  { %2614 = vrcp.f32 %v568_v13 }
 0x67e   :  { %v571_v14 = vpop.xlane.xlu0 %570 }
 0x67f   :  { %2616 = vrcp.f32 %v571_v14  ;;  %v2205_v14 = vld [vmem:[%s3311_s10] ss:$0 sm:$0xff] }
 0x682   :  { %v579_v16 = vpop.permute.xlu0 %578 }
 0x683   :  { %v584_v17 = vsel %vm362_vm4, %v579_v16, 0 }
 0x684   :  { %2402 = vmatpush3.bf16.msra.mxu1 %v584_v17 }
 0x685   :  { %2413 = vmatprep.subr.bf16.mxu1 %v2708_v15 }
 0x688   :  { %v2615_v18 = vpop.eup %2614 }
 0x689   :  { %v574_v19 = vmul.f32 %v2615_v18, %v2611_v10 }
 0x68b   :  { %v576_v20 = vpack.c.bf16 %v574_v19, %v574_v19 }
 0x68c   :  { %v2617_v21 = vpop.eup %2616 }
 0x68d   :  { %2404 = vmatmul.mubr.msk.bf16.vlgmr.msra.gmra.mxu1 %vm332_vm3, %v576_v20  ;;  %v575_v22 = vmul.f32 %v2617_v21, %v2613_v12  ;;  %v2584_v20 = vld [vmem:[%s3314_s13 + $0x18] sm:$0xff]   ;;  %v2585_v21 = vld [vmem:[%s3314_s13 + $0x10] sm:$0xff]  }
 0x68e   :  { %2417 = vmatprep.mubr.msk.bf16.mxu1 %vm2709_vm1, %v2708_v15  ;;  %2414 = vmatpush3.bf16.msra.mxu1 %v2580_v23  ;;  %v2206_v23 = vld [vmem:[%s3313_s12] ss:$0 sm:$0xff] }
 0x68f   :  { %v577_v38 = vpack.c.bf16 %v575_v22, %v575_v22  ;;  %2415 = vmatprep.subr.bf16.mxu1 %v2708_v15  ;;  %v2586_v22 = vld [vmem:[%s3314_s13 + $0x8] sm:$0xff]  }
 0x691   :  { %2410 = vmatmul.mubr.msk.bf16.vlgmr.msra.gmra.mxu0 %vm332_vm3, %v577_v38  ;;  %v2587_v38 = vld [vmem:[%s3314_s13] sm:$0xff]  }
 0x692   :  { %2425 = vmatprep.mubr.msk.bf16.mxu0 %vm2709_vm1, %v2708_v15  ;;  %2416 = vmatpush3.bf16.msra.mxu1 %v2581_v24 }
 0x693   :  { %2429 = vmatprep.subr.bf16.mxu1 %v2708_v15 }
 0x74d   :  { %v620_v25 = vpop.f32.mrf.mxu1 }
 0x74f   :  { %v2405_v26 = vpop.f32.mrf.mxu1 }
 0x751   :  { %v623_v27 = vpop.f32.mrf.mxu1  ;;  %v668_v28 = vpop.f32.mrf.mxu0 }
 0x752   :  { %v2568_v29 = vpack.i.bf16 %v668_v28, %v620_v25 }
 0x753   :  { %v2406_v30 = vpop.f32.mrf.mxu1  ;;  %v2411_v33 = vpop.f32.mrf.mxu0 }
 0x754   :  { %2569 = vrot.lane.b32.xlu1 %v2568_v29, %s3331_s2 }
 0x755   :  { %v671_v34 = vpop.f32.mrf.mxu0 }
 0x757   :  { %v2412_v35 = vpop.f32.mrf.mxu0 }
 0x7c6   :  { %v2570_v36 = vpop.permute.xlu1 %2569 }
 0x7c7   :  { %v2572_v37 = vunpack.i.h.bf16 %v2570_v36  ;;  %v2571_v39 = vunpack.i.l.bf16 %v2570_v36 }
 0x7c9   :  { %v683_v40 = vsel %vm236_vm2, %v2954_v47, %v2572_v37  ;;  %v682_v41 = vsel %vm236_vm2, %v2952_v44, %v2571_v39 }
 0x7ca   :  { %v689_v43 = vpack.c.bf16 %v683_v40, %v682_v41 }
 0x7cc   :  { %2418 = vmatmul.mubr.msk.bf16.vlgmr.msra.gmra.mxu1 %vm83_vm0, %v689_v43 }
 0x7cd   :  { %2437 = vmatprep.mubr.msk.bf16.mxu1 %vm2709_vm1, %v2708_v15  ;;  %2430 = vmatpush3.bf16.msra.mxu1 %v2584_v20  ;;  %v2216_v20 = vld [vmem:[%s3316_s15] ss:$0 sm:$0xff] }
 0x7ce   :  { %2431 = vmatprep.subr.bf16.mxu1 %v2708_v15 }
 0x7d1   :  { %2432 = vmatpush3.bf16.msra.mxu1 %v2585_v21 }
 0x7d2   :  { %2433 = vmatprep.subr.bf16.mxu1 %v2708_v15 }
 0x7d5   :  { %2434 = vmatpush3.bf16.msra.mxu1 %v2586_v22 }
 0x7d6   :  { %2435 = vmatprep.subr.bf16.mxu1 %v2708_v15 }
 0x7d9   :  { %2436 = vmatpush3.bf16.msra.mxu1 %v2587_v38 }
 0x7da   :  { %2455 = vmatprep.subr.bf16.mxu1 %v2708_v15 }
 0x88c   :  { %v745_v46 = vpop.f32.mrf.mxu1 }
 0x88d   :  { %v746_v48 = vadd.f32 %v2200_v45, %v745_v46 }
 0x88e   :  { %v2419_v49 = vpop.f32.mrf.mxu1 }
 0x88f   :  { %v752_v50 = vadd.f32 %v746_v48, %v2875_v31 }
 0x890   :  { %v748_v51 = vpop.f32.mrf.mxu1 }
 0x891   :  { %v749_v47 = vadd.f32 %v2200_v45, %v748_v51  ;;  %v756_v52 = vsel %vm83_vm0, %v752_v50, 0.0 }
 0x892   :  { %757 = vadd.xlane.f32.xlu1 %v756_v52  ;;  %v2420_v44 = vpop.f32.mrf.mxu1 }
 0x893   :  { %v753_v53 = vadd.f32 %v749_v47, %v2877_v32  ;;  %v2582_v32 = vld [vmem:[%s3312_s11 + $0x8] sm:$0xff]  }
 0x894   :  { %2422 = vmatpush3.bf16.msra.mxu0 %v2582_v32 }
 0x895   :  { %v759_v54 = vsel %vm83_vm0, %v753_v53, 0.0  ;;  %2423 = vmatprep.subr.bf16.mxu0 %v2708_v15 }
 0x896   :  { %760 = vadd.xlane.f32.xlu0 %v759_v54 }
 0x898   :  { %2424 = vmatpush3.bf16.msra.mxu0 %v2583_v2 }
 0x899   :  { %2441 = vmatprep.subr.bf16.mxu0 %v2708_v15 }
 0x91b   :  { %v758_v55 = vpop.xlane.xlu1 %757 }
 0x91c   :  { %v762_v56 = vmul.f32 0.03125, %v758_v55 }
 0x91e   :  { %v764_v57 = vsub.f32 %v752_v50, %v762_v56 }
 0x91f   :  { %v761_v58 = vpop.xlane.xlu0 %760 }
 0x920   :  { %v763_v59 = vmul.f32 0.03125, %v761_v58  ;;  %v766_v61 = vmul.f32 %v764_v57, %v764_v57 }
 0x922   :  { %v765_v62 = vsub.f32 %v753_v53, %v763_v59  ;;  %v768_v31 = vsel %vm83_vm0, %v766_v61, 0.0  ;;  %v2210_v53 = vld [vmem:[%s3315_s14] ss:$0 sm:$0xff] }
 0x923   :  { %769 = vadd.xlane.f32.xlu0 %v768_v31 }
 0x924   :  { %v767_v63 = vmul.f32 %v765_v62, %v765_v62 }
 0x926   :  { %v771_v1 = vsel %vm83_vm0, %v767_v63, 0.0 }
 0x927   :  { %772 = vadd.xlane.f32.xlu0 %v771_v1 }
 0x9ac   :  { %v770_v3 = vpop.xlane.xlu0 %769 }
 0x9ad   :  { %v774_v4 = vmul.f32 0.03125, %v770_v3 }
 0x9af   :  { %v776_v5 = vadd.f32 1e-12, %v774_v4 }
 0x9b0   :  { %v773_v6 = vpop.xlane.xlu0 %772 }
 0x9b1   :  { %2618 = vrsqrt.f32 %v776_v5  ;;  %v775_v7 = vmul.f32 0.03125, %v773_v6 }
 0x9b3   :  { %v777_v8 = vadd.f32 1e-12, %v775_v7 }
 0x9b5   :  { %2620 = vrsqrt.f32 %v777_v8 }
 0x9be   :  { %v2619_v9 = vpop.eup %2618 }
 0x9bf   :  { %v780_v10 = vmul.f32 %v2619_v9, %v764_v57 }
 0x9c1   :  { %v788_v13 = vmul.f32 %v2204_v11, %v780_v10  ;;  %v2588_v10 = vld [vmem:[%s3346_s0 + $0x18] sm:$0xff]  }
 0x9c2   :  { %v2621_v12 = vpop.eup %2620 }
 0x9c3   :  { %v781_v42 = vmul.f32 %v2621_v12, %v765_v62  ;;  %v796_v17 = vadd.f32 %v2205_v14, %v788_v13 }
 0x9c5   :  { %v789_v16 = vmul.f32 %v2204_v11, %v781_v42  ;;  %v2589_v11 = vld [vmem:[%s3346_s0 + $0x10] sm:$0xff]  }
 0x9c7   :  { %v797_v18 = vadd.f32 %v2205_v14, %v789_v16 }
 0x9c9   :  { %v803_v19 = vpack.c.bf16 %v797_v18, %v796_v17 }
 0x9cb   :  { %2426 = vmatmul.mubr.msk.bf16.vlgmr.msra.gmra.mxu0 %vm83_vm0, %v803_v19 }
 0x9cc   :  { %2445 = vmatprep.mubr.msk.bf16.mxu0 %vm2709_vm1, %v2708_v15  ;;  %2442 = vmatpush3.bf16.msra.mxu0 %v2588_v10 }
 0x9cd   :  { %2443 = vmatprep.subr.bf16.mxu0 %v2708_v15 }
 0x9d0   :  { %2444 = vmatpush3.bf16.msra.mxu0 %v2589_v11 }
 0x9d1   :  { %2449 = vmatprep.subr.bf16.mxu0 %v2708_v15 }
 0xa8b   :  { %v859_v24 = vpop.f32.mrf.mxu0 }
 0xa8c   :  { %v860_v25 = vadd.f32 %v2206_v23, %v859_v24 }
 0xa8d   :  { %v2427_v26 = vpop.f32.mrf.mxu0 }
 0xa8e   :  { %v868_v27 = vmul.f32 0.044715, %v860_v25  ;;  %v866_v49 = vmul.f32 0.5, %v860_v25 }
 0xa8f   :  { %v862_v28 = vpop.f32.mrf.mxu0 }
 0xa90   :  { %v870_v29 = vmul.f32 %v868_v27, %v860_v25  ;;  %v863_v30 = vadd.f32 %v2206_v23, %v862_v28  ;;  %v2217_v23 = vld [vmem:[%s3317_s16] ss:$0 sm:$0xff]  ;;  %v2223_v28 = vld [vmem:[%s3349_s28 + $0x1] ss:$0 sm:$0xff]  ;;  %s3353_s28 = smov 112  }
 0xa91   :  { %v2428_v33 = vpop.f32.mrf.mxu0 }
 0xa92   :  { %v872_v34 = vmul.f32 %v870_v29, %v860_v25  ;;  %v869_v35 = vmul.f32 0.044715, %v863_v30  ;;  %v867_v50 = vmul.f32 0.5, %v863_v30 }
 0xa94   :  { %v874_v36 = vadd.f32 %v872_v34, %v860_v25  ;;  %v871_v37 = vmul.f32 %v869_v35, %v863_v30 }
 0xa96   :  { %v876_v39 = vmul.f32 0.7978846, %v874_v36  ;;  %v873_v40 = vmul.f32 %v871_v37, %v863_v30 }
 0xa98   :  { %2622 = vtanh.f32 %v876_v39  ;;  %v875_v41 = vadd.f32 %v873_v40, %v863_v30 }
 0xa9a   :  { %v877_v43 = vmul.f32 0.7978846, %v875_v41 }
 0xa9c   :  { %2624 = vtanh.f32 %v877_v43 }
 0xaa5   :  { %v2623_v45 = vpop.eup %2622 }
 0xaa6   :  { %v880_v46 = vadd.f32 1.0, %v2623_v45 }
 0xaa8   :  { %v882_v47 = vmul.f32 %v880_v46, %v866_v49 }
 0xaa9   :  { %v2625_v48 = vpop.eup %2624 }
 0xaaa   :  { %v881_v51 = vadd.f32 1.0, %v2625_v48 }
 0xaac   :  { %v883_v52 = vmul.f32 %v881_v51, %v867_v50 }
 0xaae   :  { %v893_v44 = vpack.c.bf16 %v883_v52, %v882_v47 }
 0xab0   :  { %2438 = vmatmul.mubr.msk.bf16.vlgmr.msra.gmra.mxu1 %vm924_vm5, %v893_v44 }
 0xab1   :  { %2457 = vmatprep.mubr.msk.bf16.mxu1 %vm2709_vm1, %v2708_v15 }
 0xb70   :  { %v962_v54 = vpop.f32.mrf.mxu1 }
 0xb71   :  { %v963_v55 = vadd.f32 %v2210_v53, %v962_v54 }
 0xb72   :  { %v2439_v56 = vpop.f32.mrf.mxu1 }
 0xb73   :  { %v969_v57 = vadd.f32 %v963_v55, %v796_v17 }
 0xb74   :  { %v965_v58 = vpop.f32.mrf.mxu1 }
 0xb75   :  { %v966_v59 = vadd.f32 %v2210_v53, %v965_v58  ;;  %v973_v61 = vsel %vm83_vm0, %v969_v57, 0.0 }
 0xb76   :  { %974 = vadd.xlane.f32.xlu1 %v973_v61  ;;  %v2440_v62 = vpop.f32.mrf.mxu1 }
 0xb77   :  { %v970_v31 = vadd.f32 %v966_v59, %v797_v18 }
 0xb79   :  { %v976_v63 = vsel %vm83_vm0, %v970_v31, 0.0 }
 0xb7a   :  { %977 = vadd.xlane.f32.xlu0 %v976_v63 }
 0xbff   :  { %v975_v1 = vpop.xlane.xlu1 %974 }
 0xc00   :  { %v979_v32 = vmul.f32 0.03125, %v975_v1 }
 0xc02   :  { %v981_v2 = vsub.f32 %v969_v57, %v979_v32 }
 0xc03   :  { %v978_v3 = vpop.xlane.xlu0 %977 }
 0xc04   :  { %v980_v4 = vmul.f32 0.03125, %v978_v3  ;;  %v983_v5 = vmul.f32 %v981_v2, %v981_v2 }
 0xc06   :  { %v982_v6 = vsub.f32 %v970_v31, %v980_v4  ;;  %v985_v7 = vsel %vm83_vm0, %v983_v5, 0.0 }
 0xc07   :  { %986 = vadd.xlane.f32.xlu1 %v985_v7 }
 0xc08   :  { %v984_v8 = vmul.f32 %v982_v6, %v982_v6 }
 0xc0a   :  { %v988_v9 = vsel %vm83_vm0, %v984_v8, 0.0 }
 0xc0b   :  { %989 = vadd.xlane.f32.xlu0 %v988_v9 }
 0xc90   :  { %v987_v12 = vpop.xlane.xlu1 %986 }
 0xc91   :  { %v991_v42 = vmul.f32 0.03125, %v987_v12 }
 0xc93   :  { %v993_v13 = vadd.f32 1e-12, %v991_v42 }
 0xc94   :  { %v990_v14 = vpop.xlane.xlu0 %989 }
 0xc95   :  { %2626 = vrsqrt.f32 %v993_v13  ;;  %v992_v16 = vmul.f32 0.03125, %v990_v14 }
 0xc97   :  { %v994_v17 = vadd.f32 1e-12, %v992_v16 }
 0xc99   :  { %2628 = vrsqrt.f32 %v994_v17 }
 0xca2   :  { %v2627_v18 = vpop.eup %2626 }
 0xca3   :  { %v997_v19 = vmul.f32 %v2627_v18, %v981_v2 }
 0xca5   :  { %v1005_v38 = vmul.f32 %v2216_v20, %v997_v19 }
 0xca6   :  { %v2629_v21 = vpop.eup %2628 }
 0xca7   :  { %v998_v22 = vmul.f32 %v2629_v21, %v982_v6  ;;  %v3061_v25 = vadd.f32 %v2217_v23, %v1005_v38 }
 0xca9   :  { %v1006_v24 = vmul.f32 %v2216_v20, %v998_v22 }
 0xcab   :  { %v3063_v26 = vadd.f32 %v2217_v23, %v1006_v24 }
 0xcad   :  { %v1022_v27 = vpack.c.bf16 %v3063_v26, %v3061_v25 }
 0xcaf   :  { %2446 = vmatmul.mubr.msk.bf16.vlgmr.msra.gmra.mxu0 %vm83_vm0, %v1022_v27 }
 0xcb0   :  { %2451 = vmatprep.mubr.msk.bf16.mxu0 %vm2709_vm1, %v2708_v15 }
 0xd6f   :  { %v1078_v29 = vpop.f32.mrf.mxu0 }
 0xd70   :  { %v1079_v30 = vadd.f32 %v2223_v28, %v1078_v29 }
 0xd71   :  { %v2447_v33 = vpop.f32.mrf.mxu0 }
 0xd72   :  { %v3073_v34 = vpack.c.bf16 %v1079_v30, %v1079_v30 }
 0xd73   :  { %v1081_v35 = vpop.f32.mrf.mxu0 }
 0xd74   :  { %v1082_v36 = vadd.f32 %v2223_v28, %v1081_v35  ;;  %1088 = vrot.lane.b32.xlu1 %v3073_v34, %s2710_s6 }
 0xd75   :  { %v2448_v37 = vpop.f32.mrf.mxu0 }
 0xd76   :  { %v3077_v39 = vpack.c.bf16 %v1082_v36, %v1082_v36 }
 0xd78   :  { %1137 = vrot.lane.b32.xlu0 %v3077_v39, %s2710_s6  ;;  %s3354_s6 = smov 48  }
 0xde6   :  { %v1089_v40 = vpop.permute.xlu1 %1088 }
 0xde7   :  { %v1094_v41 = vsel %vm236_vm2, %v1089_v40, 0 }
 0xde8   :  { %2450 = vmatpush3.bf16.xpose.msra.mxu0 %v1094_v41 }
 0xde9   :  { %2461 = vmatprep.subr.bf16.mxu0 %v2708_v15 }
 0xdea   :  { %v1138_v43 = vpop.permute.xlu0 %1137 }
 0xdeb   :  { %v1143_v45 = vsel %vm236_vm2, %v1138_v43, 0 }
 0xdec   :  { %2456 = vmatpush3.bf16.xpose.msra.mxu1 %v1143_v45 }
 0xded   :  { %2467 = vmatprep.subr.bf16.mxu1 %v2708_v15 }
 0xdef   :  { %2452 = vmatmul.mubr.msk.bf16.vlgmr.msra.gmra.mxu0 %vm236_vm2, %v3073_v34 }
 0xdf0   :  { %2463 = vmatprep.mubr.msk.bf16.mxu0 %vm2709_vm1, %v2708_v15 }
 0xdf3   :  { %2458 = vmatmul.mubr.msk.bf16.vlgmr.msra.gmra.mxu1 %vm236_vm2, %v3077_v39 }
 0xdf4   :  { %2469 = vmatprep.mubr.msk.bf16.mxu1 %vm2709_vm1, %v2708_v15 }
 0xeaf   :  { %v1130_v46 = vpop.f32.mrf.mxu0 }
 0xeb0   :  { %v1131_v48 = vadd.f32 %v1130_v46, %v2910_v60 }
 0xeb1   :  { %v2453_v49 = vpop.f32.mrf.mxu0 }
 0xeb2   :  { %v1185_v50 = vsel %vm332_vm3, %v1131_v48, -inf }
 0xeb3   :  { %v1179_v51 = vpop.f32.mrf.mxu1  ;;  %1186 = vmax.xlane.f32.xlu1 %v1185_v50  ;;  %v1133_v47 = vpop.f32.mrf.mxu0 }
 0xeb4   :  { %v1180_v52 = vadd.f32 %v1179_v51, %v2913_v0 }
 0xeb5   :  { %v2454_v44 = vpop.f32.mrf.mxu0  ;;  %v2459_v53 = vpop.f32.mrf.mxu1 }
 0xeb6   :  { %v1188_v54 = vsel %vm332_vm3, %v1180_v52, -inf }
 0xeb7   :  { %1189 = vmax.xlane.f32.xlu0 %v1188_v54  ;;  %v1182_v55 = vpop.f32.mrf.mxu1 }
 0xeb9   :  { %v2460_v56 = vpop.f32.mrf.mxu1 }
 0xec4   :  { %1209 = vrot.lane.b32.xlu1 %v3073_v34, %s2712_s30 }
 0xf3c   :  { %v1187_v57 = vpop.xlane.xlu1 %1186 }
 0xf3d   :  { %v1191_v58 = vsub.f32 %v1131_v48, %v1187_v57 }
 0xf3f   :  { %v1193_v59 = vmul.f32 1.442695, %v1191_v58 }
 0xf40   :  { %v1190_v61 = vpop.xlane.xlu0 %1189  ;;  %v1210_v62 = vpop.permute.xlu1 %1209 }
 0xf41   :  { %2630 = vpow2.f32 %v1193_v59  ;;  %v1192_v31 = vsub.f32 %v1180_v52, %v1190_v61  ;;  %v1215_v63 = vsel %vm362_vm4, %v1210_v62, 0 }
 0xf42   :  { %2462 = vmatpush3.bf16.msra.mxu0 %v1215_v63 }
 0xf43   :  { %v1195_v1 = vmul.f32 1.442695, %v1192_v31  ;;  %2473 = vmatprep.subr.bf16.mxu0 %v2708_v15 }
 0xf45   :  { %2632 = vpow2.f32 %v1195_v1 }
 0xf4e   :  { %v2631_v32 = vpop.eup %2630 }
 0xf4f   :  { %v1197_v2 = vsel %vm332_vm3, %v2631_v32, 0.0 }
 0xf50   :  { %1198 = vadd.xlane.f32.xlu1 %v1197_v2  ;;  %v2590_v2 = vld [vmem:[%s3351_s5 + $0x18] sm:$0xff]  }
 0xf52   :  { %v2633_v3 = vpop.eup %2632 }
 0xf53   :  { %v1200_v4 = vsel %vm332_vm3, %v2633_v3, 0.0 }
 0xf54   :  { %1201 = vadd.xlane.f32.xlu0 %v1200_v4 }
 0xf61   :  { %1307 = vrot.lane.b32.xlu1 %v3073_v34, %s2713_s3 }
 0xf65   :  { %1357 = vrot.lane.b32.xlu1 %v3077_v39, %s2713_s3 }
 0xf69   :  { %1305 = vrot.lane.b32.xlu1 %v3073_v34, %s3353_s28 }
 0xf6a   :  { %1257 = vrot.lane.b32.xlu0 %v3077_v39, %s2712_s30  ;;  %s3356_s30 = sld [smem:[#allocation10_spill]] }
 0xf6e   :  { %1355 = vrot.lane.b32.xlu0 %v3077_v39, %s3353_s28 }
 0xfd9   :  { %v1199_v5 = vpop.xlane.xlu1 %1198 }
 0xfda   :  { %2634 = vrcp.f32 %v1199_v5 }
 0xfdd   :  { %v1202_v6 = vpop.xlane.xlu0 %1201  ;;  %v1308_v10 = vpop.permute.xlu1 %1307 }
 0xfde   :  { %2636 = vrcp.f32 %v1202_v6  ;;  %v1313_v13 = vsel %vm236_vm2, %v1308_v10, 0 }
 0xfe1   :  { %v1258_v7 = vpop.permute.xlu0 %1257  ;;  %v1358_v16 = vpop.permute.xlu1 %1357 }
 0xfe2   :  { %v1263_v8 = vsel %vm362_vm4, %v1258_v7, 0  ;;  %v1363_v18 = vsel %vm236_vm2, %v1358_v16, 0 }
 0xfe3   :  { %2468 = vmatpush3.bf16.msra.mxu1 %v1263_v8 }
 0xfe4   :  { %2479 = vmatprep.subr.bf16.mxu1 %v2708_v15 }
 0xfe5   :  { %v1306_v19 = vpop.permute.xlu1 %1305  ;;  %v1356_v20 = vpop.permute.xlu0 %1355 }
 0xfe7   :  { %v2635_v9 = vpop.eup %2634 }
 0xfe8   :  { %v1205_v11 = vmul.f32 %v2635_v9, %v2631_v32 }
 0xfea   :  { %v1207_v12 = vpack.c.bf16 %v1205_v11, %v1205_v11 }
 0xfeb   :  { %v2637_v42 = vpop.eup %2636 }
 0xfec   :  { %2464 = vmatmul.mubr.msk.bf16.vlgmr.msra.gmra.mxu0 %vm332_vm3, %v1207_v12  ;;  %v1206_v14 = vmul.f32 %v2637_v42, %v2633_v3  ;;  %v2591_v3 = vld [vmem:[%s3351_s5 + $0x10] sm:$0xff]  }
 0xfed   :  { %2474 = vmatpush3.bf16.xpose.msra.mxu0 %v1313_v13  ;;  %2475 = vmatprep.mubr.msk.bf16.mxu0 %vm2709_vm1, %v2708_v15 }
 0xfee   :  { %v1208_v17 = vpack.c.bf16 %v1206_v14, %v1206_v14  ;;  %2485 = vmatprep.subr.bf16.mxu0 %v2708_v15 }
 0xff0   :  { %2470 = vmatmul.mubr.msk.bf16.vlgmr.msra.gmra.mxu1 %vm332_vm3, %v1208_v17 }
 0xff1   :  { %2480 = vmatpush3.bf16.xpose.msra.mxu1 %v1363_v18  ;;  %2481 = vmatprep.mubr.msk.bf16.mxu1 %vm2709_vm1, %v2708_v15 }
 0xff2   :  { %2491 = vmatprep.subr.bf16.mxu1 %v2708_v15 }
 0xff4   :  { %2476 = vmatmul.mubr.msk.bf16.vlgmr.msra.gmra.mxu0 %vm236_vm2, %v1306_v19  ;;  %v2240_v19 = vld [vmem:[%s3352_s4 + $0x1] ss:$0 sm:$0xff] }
 0xff5   :  { %2487 = vmatprep.mubr.msk.bf16.mxu0 %vm2709_vm1, %v2708_v15 }
 0xff8   :  { %2482 = vmatmul.mubr.msk.bf16.vlgmr.msra.gmra.mxu1 %vm236_vm2, %v1356_v20 }
 0xff9   :  { %2493 = vmatprep.mubr.msk.bf16.mxu1 %vm2709_vm1, %v2708_v15 }
0x10ac   :  { %v3131_v21 = vpop.f32.mrf.mxu0 }
0x10ae   :  { %v2465_v22 = vpop.f32.mrf.mxu0 }
0x10b0   :  { %v1254_v38 = vpop.f32.mrf.mxu0  ;;  %v3133_v23 = vpop.f32.mrf.mxu1 }
0x10b2   :  { %v2466_v24 = vpop.f32.mrf.mxu0  ;;  %v2471_v27 = vpop.f32.mrf.mxu1 }
0x10b4   :  { %v1302_v28 = vpop.f32.mrf.mxu1  ;;  %v1349_v29 = vpop.f32.mrf.mxu0 }
0x10b5   :  { %v1350_v30 = vadd.f32 %v1349_v29, %v2910_v60 }
0x10b6   :  { %v2472_v33 = vpop.f32.mrf.mxu1  ;;  %v2477_v35 = vpop.f32.mrf.mxu0 }
0x10b7   :  { %v1405_v36 = vsel %vm332_vm3, %v1350_v30, -inf }
0x10b8   :  { %v1399_v37 = vpop.f32.mrf.mxu1  ;;  %1406 = vmax.xlane.f32.xlu1 %v1405_v36  ;;  %v1352_v40 = vpop.f32.mrf.mxu0 }
0x10b9   :  { %v1400_v41 = vadd.f32 %v1399_v37, %v2913_v0 }
0x10ba   :  { %v2478_v43 = vpop.f32.mrf.mxu0  ;;  %v2483_v45 = vpop.f32.mrf.mxu1 }
0x10bb   :  { %v1408_v46 = vsel %vm332_vm3, %v1400_v41, -inf }
0x10bc   :  { %1409 = vmax.xlane.f32.xlu0 %v1408_v46  ;;  %v1402_v48 = vpop.f32.mrf.mxu1 }
0x10bd   :  { %v2593_v48 = vld [vmem:[%s3312_s11 + $0x10] sm:$0xff]  }
0x10be   :  { %v2484_v49 = vpop.f32.mrf.mxu1 }
0x10c9   :  { %1429 = vrot.lane.b32.xlu1 %v3073_v34, %s3354_s6 }
0x1141   :  { %v1407_v60 = vpop.xlane.xlu1 %1406 }
0x1142   :  { %v1411_v50 = vsub.f32 %v1350_v30, %v1407_v60 }
0x1144   :  { %v1413_v51 = vmul.f32 1.442695, %v1411_v50 }
0x1145   :  { %v1410_v47 = vpop.xlane.xlu0 %1409  ;;  %v1430_v52 = vpop.permute.xlu1 %1429 }
0x1146   :  { %2638 = vpow2.f32 %v1413_v51  ;;  %v1412_v44 = vsub.f32 %v1400_v41, %v1410_v47  ;;  %v1435_v53 = vsel %vm362_vm4, %v1430_v52, 0 }
0x1147   :  { %2486 = vmatpush3.bf16.msra.mxu0 %v1435_v53 }
0x1148   :  { %v1415_v0 = vmul.f32 1.442695, %v1412_v44  ;;  %2497 = vmatprep.subr.bf16.mxu0 %v2708_v15 }
0x114a   :  { %2640 = vpow2.f32 %v1415_v0  ;;  %v2246_v0 = vld [vmem:[%s3310_s9 + $0x1] ss:$0 sm:$0xff]  ;;  %s2717_s9 = smov 32  }
0x1153   :  { %v2639_v54 = vpop.eup %2638 }
0x1154   :  { %v1417_v55 = vsel %vm332_vm3, %v2639_v54, 0.0 }
0x1155   :  { %1418 = vadd.xlane.f32.xlu0 %v1417_v55 }
0x1157   :  { %v2641_v56 = vpop.eup %2640 }
0x1158   :  { %v1420_v34 = vsel %vm332_vm3, %v2641_v56, 0.0 }
0x1159   :  { %1421 = vadd.xlane.f32.xlu0 %v1420_v34  ;;  %v2247_v34 = vld [vmem:[%s3311_s10 + $0x1] ss:$0 sm:$0xff] }
0x116f   :  { %1477 = vrot.lane.b32.xlu0 %v3077_v39, %s3354_s6 }
0x11de   :  { %v1419_v57 = vpop.xlane.xlu0 %1418 }
0x11df   :  { %2642 = vrcp.f32 %v1419_v57 }
0x11e2   :  { %v1422_v58 = vpop.xlane.xlu0 %1421 }
0x11e3   :  { %2644 = vrcp.f32 %v1422_v58 }
0x11e6   :  { %v1478_v59 = vpop.permute.xlu0 %1477 }
0x11e7   :  { %v1483_v61 = vsel %vm362_vm4, %v1478_v59, 0 }
0x11e8   :  { %2492 = vmatpush3.bf16.msra.mxu1 %v1483_v61 }
0x11e9   :  { %2505 = vmatprep.subr.bf16.mxu1 %v2708_v15 }
0x11ec   :  { %v2643_v62 = vpop.eup %2642 }
0x11ed   :  { %v1425_v31 = vmul.f32 %v2643_v62, %v2639_v54  ;;  %v2594_v62 = vld [vmem:[%s3314_s13 + $0x38] sm:$0xff]  }
0x11ef   :  { %v1427_v63 = vpack.c.bf16 %v1425_v31, %v1425_v31  ;;  %v2595_v31 = vld [vmem:[%s3314_s13 + $0x30] sm:$0xff]  }
0x11f0   :  { %v2645_v1 = vpop.eup %2644 }
0x11f1   :  { %2488 = vmatmul.mubr.msk.bf16.vlgmr.msra.gmra.mxu0 %vm332_vm3, %v1427_v63  ;;  %v1426_v32 = vmul.f32 %v2645_v1, %v2641_v56  ;;  %v2596_v63 = vld [vmem:[%s3314_s13 + $0x28] sm:$0xff]   ;;  %v2597_v1 = vld [vmem:[%s3314_s13 + $0x20] sm:$0xff]  }
0x11f2   :  { %2501 = vmatprep.mubr.msk.bf16.mxu0 %vm2709_vm1, %v2708_v15  ;;  %2498 = vmatpush3.bf16.msra.mxu0 %v2590_v2 }
0x11f3   :  { %v1428_v39 = vpack.c.bf16 %v1426_v32, %v1426_v32  ;;  %2499 = vmatprep.subr.bf16.mxu0 %v2708_v15  ;;  %v2253_v32 = vld [vmem:[%s3313_s12 + $0x1] ss:$0 sm:$0xff] }
0x11f5   :  { %2494 = vmatmul.mubr.msk.bf16.vlgmr.msra.gmra.mxu1 %vm332_vm3, %v1428_v39 }
0x11f6   :  { %2509 = vmatprep.mubr.msk.bf16.mxu1 %vm2709_vm1, %v2708_v15  ;;  %2500 = vmatpush3.bf16.msra.mxu0 %v2591_v3 }
0x11f7   :  { %2513 = vmatprep.subr.bf16.mxu0 %v2708_v15 }
0x12b1   :  { %v1471_v4 = vpop.f32.mrf.mxu0 }
0x12b3   :  { %v2489_v5 = vpop.f32.mrf.mxu0 }
0x12b5   :  { %v1474_v6 = vpop.f32.mrf.mxu0  ;;  %v1519_v7 = vpop.f32.mrf.mxu1 }
0x12b6   :  { %v2573_v8 = vpack.i.bf16 %v1519_v7, %v1471_v4 }
0x12b7   :  { %v2490_v9 = vpop.f32.mrf.mxu0  ;;  %v2495_v10 = vpop.f32.mrf.mxu1 }
0x12b8   :  { %2574 = vrot.lane.b32.xlu1 %v2573_v8, %s3355_s27 }
0x12b9   :  { %v1522_v11 = vpop.f32.mrf.mxu1 }
0x12bb   :  { %v2496_v12 = vpop.f32.mrf.mxu1 }
0x132a   :  { %v2575_v42 = vpop.permute.xlu1 %2574 }
0x132b   :  { %v2577_v13 = vunpack.i.h.bf16 %v2575_v42  ;;  %v2576_v14 = vunpack.i.l.bf16 %v2575_v42 }
0x132d   :  { %v1534_v16 = vsel %vm236_vm2, %v3133_v23, %v2577_v13  ;;  %v1533_v17 = vsel %vm236_vm2, %v3131_v21, %v2576_v14 }
0x132e   :  { %v1542_v18 = vpack.c.bf16 %v1534_v16, %v1533_v17 }
0x1330   :  { %2502 = vmatmul.mubr.msk.bf16.vlgmr.msra.gmra.mxu0 %vm83_vm0, %v1542_v18 }
0x1331   :  { %2521 = vmatprep.mubr.msk.bf16.mxu0 %vm2709_vm1, %v2708_v15  ;;  %2514 = vmatpush3.bf16.msra.mxu0 %v2594_v62 }
0x1332   :  { %2515 = vmatprep.subr.bf16.mxu0 %v2708_v15 }
0x1335   :  { %2516 = vmatpush3.bf16.msra.mxu0 %v2595_v31 }
0x1336   :  { %2517 = vmatprep.subr.bf16.mxu0 %v2708_v15 }
0x1339   :  { %2518 = vmatpush3.bf16.msra.mxu0 %v2596_v63  ;;  %v2274_v63 = vld [vmem:[%s3316_s15 + $0x1] ss:$0 sm:$0xff] }
0x133a   :  { %2519 = vmatprep.subr.bf16.mxu0 %v2708_v15 }
0x133d   :  { %2520 = vmatpush3.bf16.msra.mxu0 %v2597_v1 }
0x13f0   :  { %v1598_v20 = vpop.f32.mrf.mxu0 }
0x13f1   :  { %v1599_v22 = vadd.f32 %v2240_v19, %v1598_v20 }
0x13f2   :  { %v2503_v38 = vpop.f32.mrf.mxu0 }
0x13f3   :  { %v1605_v24 = vadd.f32 %v1599_v22, %v3061_v25 }
0x13f4   :  { %v1601_v27 = vpop.f32.mrf.mxu0 }
0x13f5   :  { %v1602_v23 = vadd.f32 %v2240_v19, %v1601_v27  ;;  %v1611_v28 = vsel %vm83_vm0, %v1605_v24, 0.0 }
0x13f6   :  { %1612 = vadd.xlane.f32.xlu1 %v1611_v28  ;;  %v2504_v21 = vpop.f32.mrf.mxu0  ;;  %v2266_v28 = vld [vmem:[%s3315_s14 + $0x1] ss:$0 sm:$0xff] }
0x13f7   :  { %v1606_v29 = vadd.f32 %v1602_v23, %v3063_v26  ;;  %v2592_v26 = vld [vmem:[%s3312_s11 + $0x18] sm:$0xff]  }
0x13f8   :  { %2506 = vmatpush3.bf16.msra.mxu1 %v2592_v26 }
0x13f9   :  { %v1614_v30 = vsel %vm83_vm0, %v1606_v29, 0.0  ;;  %2507 = vmatprep.subr.bf16.mxu1 %v2708_v15 }
0x13fa   :  { %1615 = vadd.xlane.f32.xlu0 %v1614_v30 }
0x13fc   :  { %2508 = vmatpush3.bf16.msra.mxu1 %v2593_v48 }
0x13fd   :  { %2525 = vmatprep.subr.mxu1 %v2708_v15 }
0x147f   :  { %v1613_v33 = vpop.xlane.xlu1 %1612 }
0x1480   :  { %v1617_v35 = vmul.f32 0.03125, %v1613_v33 }
0x1482   :  { %v1619_v36 = vsub.f32 %v1605_v24, %v1617_v35 }
0x1483   :  { %v1616_v37 = vpop.xlane.xlu0 %1615 }
0x1484   :  { %v1618_v40 = vmul.f32 0.03125, %v1616_v37  ;;  %v1621_v41 = vmul.f32 %v1619_v36, %v1619_v36 }
0x1486   :  { %v1620_v43 = vsub.f32 %v1606_v29, %v1618_v40  ;;  %v1623_v25 = vsel %vm83_vm0, %v1621_v41, 0.0 }
0x1487   :  { %1624 = vadd.xlane.f32.xlu0 %v1623_v25 }
0x1488   :  { %v1622_v45 = vmul.f32 %v1620_v43, %v1620_v43 }
0x148a   :  { %v1626_v46 = vsel %vm83_vm0, %v1622_v45, 0.0 }
0x148b   :  { %1627 = vadd.xlane.f32.xlu1 %v1626_v46 }
0x1510   :  { %v1625_v49 = vpop.xlane.xlu0 %1624 }
0x1511   :  { %v1629_v60 = vmul.f32 0.03125, %v1625_v49 }
0x1513   :  { %v1631_v50 = vadd.f32 1e-12, %v1629_v60 }
0x1514   :  { %v1628_v51 = vpop.xlane.xlu1 %1627 }
0x1515   :  { %2646 = vrsqrt.f32 %v1631_v50  ;;  %v1630_v47 = vmul.f32 0.03125, %v1628_v51 }
0x1517   :  { %v1632_v52 = vadd.f32 1e-12, %v1630_v47 }
0x1519   :  { %2648 = vrsqrt.f32 %v1632_v52  ;;  %v1883_v52 = vld [vmem:[%s3318_s17 + $0x18] sm:$0xff] }
0x1522   :  { %v2647_v44 = vpop.eup %2646 }
0x1523   :  { %v1635_v53 = vmul.f32 %v2647_v44, %v1619_v36  ;;  %v1882_v44 = vld [vmem:[%s3318_s17 + $0x10] sm:$0xff] }
0x1525   :  { %v1643_v56 = vmul.f32 %v2246_v0, %v1635_v53  ;;  %v1881_v53 = vld [vmem:[%s3318_s17 + $0x8] sm:$0xff] }
0x1526   :  { %v2649_v54 = vpop.eup %2648 }
0x1527   :  { %v1636_v55 = vmul.f32 %v2649_v54, %v1620_v43  ;;  %v1651_v58 = vadd.f32 %v2247_v34, %v1643_v56  ;;  %v1965_v54 = vld [vmem:[%s3356_s30] sm:$0x3] }
0x1529   :  { %v1644_v57 = vmul.f32 %v2246_v0, %v1636_v55  ;;  %v1880_v0 = vld [vmem:[%s3318_s17] sm:$0xff] }
0x152b   :  { %v1652_v59 = vadd.f32 %v2247_v34, %v1644_v57 }
0x152d   :  { %v1660_v61 = vpack.c.bf16 %v1652_v59, %v1651_v58 }
0x152f   :  { %2510 = vmatmul.mubr.msk.bf16.vlgmr.msra.gmra.mxu1 %vm83_vm0, %v1660_v61 }
0x1530   :  { %2533 = vmatprep.mubr.msk.f32.mxu1 %vm2709_vm1, %v2708_v15  ;;  %2526 = vmatpush3.msra.mxu1 %v1883_v52 }
0x1531   :  { %2527 = vmatprep.subr.mxu1 %v2708_v15 }
0x1532   :  { %2528 = vmatpush3.msra.mxu1 %v1882_v44 }
0x1533   :  { %2529 = vmatprep.subr.mxu1 %v2708_v15 }
0x1534   :  { %2530 = vmatpush3.msra.mxu1 %v1881_v53 }
0x1535   :  { %2531 = vmatprep.subr.mxu1 %v2708_v15 }
0x1536   :  { %2532 = vmatpush3.msra.mxu1 %v1880_v0 }
0x1537   :  { %2536 = vmatprep.subr.mxu1 %v2708_v15 }
0x15ef   :  { %v1716_v39 = vpop.f32.mrf.mxu1 }
0x15f0   :  { %v1717_v2 = vadd.f32 %v2253_v32, %v1716_v39 }
0x15f1   :  { %v2511_v3 = vpop.f32.mrf.mxu1 }
0x15f2   :  { %v1725_v4 = vmul.f32 0.044715, %v1717_v2  ;;  %v1723_v20 = vmul.f32 0.5, %v1717_v2 }
0x15f3   :  { %v1719_v5 = vpop.f32.mrf.mxu1 }
0x15f4   :  { %v1727_v6 = vmul.f32 %v1725_v4, %v1717_v2  ;;  %v1720_v7 = vadd.f32 %v2253_v32, %v1719_v5 }
0x15f5   :  { %v2512_v8 = vpop.f32.mrf.mxu1 }
0x15f6   :  { %v1729_v9 = vmul.f32 %v1727_v6, %v1717_v2  ;;  %v1726_v10 = vmul.f32 0.044715, %v1720_v7  ;;  %v1724_v22 = vmul.f32 0.5, %v1720_v7  ;;  %v1974_v8 = vld [vmem:[%s3320_s19 + $0x18] sm:$0xff] }
0x15f8   :  { %v1731_v11 = vadd.f32 %v1729_v9, %v1717_v2  ;;  %v1728_v12 = vmul.f32 %v1726_v10, %v1720_v7  ;;  %v2275_v2 = vld [vmem:[%s3317_s16 + $0x1] ss:$0 sm:$0xff]  ;;  %v1973_v9 = vld [vmem:[%s3320_s19 + $0x10] sm:$0xff]  ;;  %v1972_v10 = vld [vmem:[%s3320_s19 + $0x8] sm:$0xff] }
0x15fa   :  { %v1733_v42 = vmul.f32 0.7978846, %v1731_v11  ;;  %v1730_v13 = vmul.f32 %v1728_v12, %v1720_v7  ;;  %v1971_v11 = vld [vmem:[%s3320_s19] sm:$0xff] }
0x15fb   :  { %v2276_v12 = vld [vmem:[%s3319_s18] ss:$0 sm:$0xff] }
0x15fc   :  { %2650 = vtanh.f32 %v1733_v42  ;;  %v1732_v14 = vadd.f32 %v1730_v13, %v1720_v7  ;;  %v1975_v7 = vld [vmem:[%s3320_s19 + $0x20] sm:$0xf] }
0x15fe   :  { %v1734_v16 = vmul.f32 0.7978846, %v1732_v14 }
0x1600   :  { %2652 = vtanh.f32 %v1734_v16 }
0x1609   :  { %v2651_v17 = vpop.eup %2650 }
0x160a   :  { %v1737_v18 = vadd.f32 1.0, %v2651_v17 }
0x160c   :  { %v1739_v24 = vmul.f32 %v1737_v18, %v1723_v20  ;;  %v2061_v20 = vld [vmem:[%s3322_s21] sm:$0xff] }
0x160d   :  { %v2653_v19 = vpop.eup %2652 }
0x160e   :  { %v1738_v38 = vadd.f32 1.0, %v2653_v19  ;;  %v2062_v19 = vld [vmem:[%s3322_s21 + $0x8] sm:$0xff] }
0x1610   :  { %v1740_v27 = vmul.f32 %v1738_v38, %v1724_v22  ;;  %v2278_v22 = vld [vmem:[%s3321_s20] ss:$0 sm:$0xff]  ;;  %s2718_s20 = smov [#allocation4]  }
0x1611   :  { %s2174_s21 = sshll.u32 %s2718_s20, 4  ;;  %s2175_s21 = int_to_ptr.vmem [resolvable:$true] %s2174_s21 }
0x1612   :  { %v1752_v23 = vpack.c.bf16 %v1740_v27, %v1739_v24  ;;  %s2664_s30 = scalar_lea.vmem %s2175_s21, 32  ;;  %p2669_p1 = scmp.lt.s32.totalorder %s2175_s21, %s2175_s21 }
0x1613   :  { %p2665_p0 = scmp.ne.s32.totalorder %s2175_s21, %s2664_s30  ;;  %p2670_p2 = scmp.lt.s32.totalorder %s2664_s30, %s2664_s30 }
0x1614   :  { %2522 = vmatmul.mubr.msk.bf16.vlgmr.msra.gmra.mxu0 %vm924_vm5, %v1752_v23 }
0x1615   :  { %p2671_p3 = por %p2670_p2, %p2669_p1 }
0x1617   :  { %p2672_p4 = pnand %p2671_p3, %p2665_p0 }
0x16d4   :  { %v1820_v21 = vpop.f32.mrf.mxu0 }
0x16d5   :  { %v1821_v29 = vadd.f32 %v2266_v28, %v1820_v21 }
0x16d6   :  { %v2523_v30 = vpop.f32.mrf.mxu0 }
0x16d7   :  { %v1827_v33 = vadd.f32 %v1821_v29, %v1651_v58 }
0x16d8   :  { %v1823_v35 = vpop.f32.mrf.mxu0 }
0x16d9   :  { %v1824_v36 = vadd.f32 %v2266_v28, %v1823_v35  ;;  %v1833_v37 = vsel %vm83_vm0, %v1827_v33, 0.0  ;;  %v2281_v28 = vld [vmem:[%s3323_s22] ss:$0 sm:$0xff] }
0x16da   :  { %1834 = vadd.xlane.f32.xlu1 %v1833_v37  ;;  %v2524_v40 = vpop.f32.mrf.mxu0 }
0x16db   :  { %v1828_v41 = vadd.f32 %v1824_v36, %v1652_v59 }
0x16dd   :  { %v1836_v43 = vsel %vm83_vm0, %v1828_v41, 0.0 }
0x16de   :  { %1837 = vadd.xlane.f32.xlu0 %v1836_v43 }
0x1763   :  { %v1835_v25 = vpop.xlane.xlu1 %1834 }
0x1764   :  { %v1839_v45 = vmul.f32 0.03125, %v1835_v25 }
0x1766   :  { %v1841_v46 = vsub.f32 %v1827_v33, %v1839_v45 }
0x1767   :  { %v1838_v26 = vpop.xlane.xlu0 %1837 }
0x1768   :  { %v1840_v48 = vmul.f32 0.03125, %v1838_v26  ;;  %v1843_v49 = vmul.f32 %v1841_v46, %v1841_v46 }
0x176a   :  { %v1842_v60 = vsub.f32 %v1828_v41, %v1840_v48  ;;  %v1845_v50 = vsel %vm83_vm0, %v1843_v49, 0.0 }
0x176b   :  { %1846 = vadd.xlane.f32.xlu1 %v1845_v50 }
0x176c   :  { %v1844_v51 = vmul.f32 %v1842_v60, %v1842_v60 }
0x176e   :  { %v1848_v47 = vsel %vm83_vm0, %v1844_v51, 0.0 }
0x176f   :  { %1849 = vadd.xlane.f32.xlu0 %v1848_v47 }
0x1785   :  { %1967 = vrot.lane.b32.xlu0 %v1965_v54, %s2717_s9 }
0x17f4   :  { %v1847_v55 = vpop.xlane.xlu1 %1846 }
0x17f5   :  { %v1851_v56 = vmul.f32 0.03125, %v1847_v55 }
0x17f7   :  { %v1853_v34 = vadd.f32 1e-12, %v1851_v56 }
0x17f8   :  { %v1850_v57 = vpop.xlane.xlu0 %1849 }
0x17f9   :  { %2654 = vrsqrt.f32 %v1853_v34  ;;  %v1852_v58 = vmul.f32 0.03125, %v1850_v57 }
0x17fb   :  { %v1854_v59 = vadd.f32 1e-12, %v1852_v58 }
0x17fc   :  { %v1968_v16 = vpop.permute.xlu0 %1967 }
0x17fd   :  { %2656 = vrsqrt.f32 %v1854_v59 }
0x1806   :  { %v2655_v61 = vpop.eup %2654 }
0x1807   :  { %v1857_v62 = vmul.f32 %v2655_v61, %v1841_v46 }
0x1809   :  { %v1865_v32 = vmul.f32 %v2274_v63, %v1857_v62 }
0x180a   :  { %v2657_v31 = vpop.eup %2656 }
0x180b   :  { %v1858_v1 = vmul.f32 %v2657_v31, %v1842_v60  ;;  %v1873_v4 = vadd.f32 %v2275_v2, %v1865_v32 }
0x180d   :  { %v1866_v39 = vmul.f32 %v2274_v63, %v1858_v1 }
0x180f   :  { %v1874_v3 = vadd.f32 %v2275_v2, %v1866_v39 }
0x1811   :  { %v1876_v5 = vrot.slane %v1874_v3, 7 }
0x1813   :  { %v1879_v6 = vsel %vm1878_vm6, %v1873_v4, %v1876_v5 }
0x1814   :  { %2534 = vmatmul.mubr.msk.f32.vlgmr.msra.gmra.mxu1 %vm83_vm0, %v1879_v6 }
0x1815   :  { %2546 = vmatprep.mubr.msk.f32.mxu1 %vm2709_vm1, %v2708_v15  ;;  %2537 = vmatpush3.msk.msra.mxu1 %vm362_vm4, %v1975_v7 }
0x1816   :  { %2538 = vmatprep.subr.mxu1 %v2708_v15 }
0x1817   :  { %2539 = vmatpush3.msra.mxu1 %v1974_v8 }
0x1818   :  { %2540 = vmatprep.subr.mxu1 %v2708_v15 }
0x1819   :  { %2541 = vmatpush3.msra.mxu1 %v1973_v9 }
0x181a   :  { %2542 = vmatprep.subr.mxu1 %v2708_v15 }
0x181b   :  { %2543 = vmatpush3.msra.mxu1 %v1972_v10 }
0x181c   :  { %2544 = vmatprep.subr.mxu1 %v2708_v15 }
0x181d   :  { %2545 = vmatpush3.msra.mxu1 %v1971_v11 }
0x181e   :  { %2549 = vmatprep.subr.mxu1 %v2708_v15 }
0x18d4   :  { %v1960_v42 = vpop.f32.mrf.mxu1 }
0x18d5   :  { %v1961_v13 = vadd.f32 %v2276_v12, %v1960_v42 }
0x18d6   :  { %v2535_v14 = vpop.f32.mrf.mxu1 }
0x18d7   :  { %2658 = vtanh.f32 %v1961_v13 }
0x18e4   :  { %v2659_v17 = vpop.eup %2658 }
0x18e5   :  { %v1970_v18 = vsel %vm83_vm0, %v2659_v17, %v1968_v16 }
0x18e6   :  { %2547 = vmatmul.mubr.msk.f32.vlgmr.msra.gmra.mxu1 %vm1983_vm7, %v1970_v18 }
0x18e7   :  { %2553 = vmatprep.mubr.msk.f32.mxu1 %vm2709_vm1, %v2708_v15  ;;  %2550 = vmatpush3.msra.mxu1 %v2062_v19 }
0x18e8   :  { %2551 = vmatprep.subr.mxu1 %v2708_v15 }
0x18e9   :  { %2552 = vmatpush3.msra.mxu1 %v2061_v20 }
0x19a6   :  { %v2056_v38 = vpop.f32.mrf.mxu1 }
0x19a7   :  { %v2057_v24 = vadd.f32 %v2278_v22, %v2056_v38 }
0x19a8   :  { %v2548_v27 = vpop.f32.mrf.mxu1 }
0x19a9   :  { %v2060_v23 = vmax.f32 %v2057_v24, 0.0 }
0x19ab   :  { %2554 = vmatmul.mubr.msk.f32.vlgmr.msra.gmra.mxu1 %vm236_vm2, %v2060_v23  ;;  %2157 = vst.msk [vmem:[#allocation4] sm:$0x3] %vm2156_vm8, %v2060_v23 }
0x1a6b   :  { %v2139_v21 = vpop.f32.mrf.mxu1 }
0x1a6c   :  { %v2140_v15 = vadd.f32 %v2281_v28, %v2139_v21 }
0x1a6d   :  { %v2555_v29 = vpop.f32.mrf.mxu1 }
0x1a6e   :  { %v2144_v30 = vsel %vm2143_vm9, %v2140_v15, -inf }
0x1a6f   :  { %2145 = vmax.xlane.f32.xlu1 %v2144_v30 }
0x1af8   :  { %v2146_v33 = vpop.xlane.xlu1 %2145 }
0x1af9   :  { %v2147_v35 = vsub.f32 %v2140_v15, %v2146_v33 }
0x1afb   :  { %v2148_v36 = vmul.f32 1.442695, %v2147_v35 }
0x1afd   :  { %2660 = vpow2.f32 %v2148_v36 }
0x1b0a   :  { %v2661_v37 = vpop.eup %2660 }
0x1b0b   :  { %v2150_v40 = vsel %vm2143_vm9, %v2661_v37, 0.0 }
0x1b0c   :  { %2151 = vadd.xlane.f32.xlu1 %v2150_v40 }
0x1b0d   :  { %2675 = shalt.err (!%p2672_p4)
}
0x1b0e   :  { %2177 = dma.vmem_to_hbm [thread:$0]  %s2175_s21, 32, %s3325_s24, [#allocation5]  }
0x1b0f   :  { %s2719_s17 = smov [#allocation2]  }
0x1b10   :  { %s2164_s3 = sshll.u32 %s2719_s17, 4  ;;  %s2165_s3 = int_to_ptr.vmem [resolvable:$true] %s2164_s3 }
0x1b11   :  { %s2684_s10 = scalar_lea.vmem %s2165_s3, 32  ;;  %p2689_p6 = scmp.lt.s32.totalorder %s2165_s3, %s2165_s3 }
0x1b12   :  { %p2685_p5 = scmp.ne.s32.totalorder %s2165_s3, %s2684_s10  ;;  %p2690_p7 = scmp.lt.s32.totalorder %s2684_s10, %s2684_s10 }
0x1b14   :  { %p2691_p8 = por %p2690_p7, %p2689_p6 }
0x1b16   :  { %p2692_p9 = pnand %p2691_p8, %p2685_p5 }
0x1b95   :  { %v2152_v41 = vpop.xlane.xlu1 %2151 }
0x1b96   :  { %2662 = vrcp.f32 %v2152_v41 }
0x1ba3   :  { %v2663_v43 = vpop.eup %2662 }
0x1ba4   :  { %v2154_v25 = vmul.f32 %v2663_v43, %v2661_v37 }
0x1ba6   :  { %2155 = vst.msk [vmem:[#allocation2] sm:$0x3] %vm2143_vm9, %v2154_v25 }
0x1ba7   :  { %2695 = shalt.err (!%p2692_p9)
}
0x1ba8   :  { %2167 = dma.vmem_to_hbm [thread:$0]  %s2165_s3, 32, %s3324_s23, [#allocation3]  }
0x1ba9   :  { %2704 = dma.done.wait [#allocation3], 32  }
0x1baa   :  { %2705 = vsyncadd [#allocation3], 4294967264 }
0x1bab   :  { %2706 = dma.done.wait [#allocation5], 32  }
0x1bac   :  { %2707 = vsyncadd [#allocation5], 4294967264 }
0x1bad   :  { %2184 = vsyncpa [#allocation3], 1 }
0x1bae   :  { %2185 = vsyncpa [#allocation5], 1 }

</bundles_post_ra>
